<compile_context>
chip_gen: v7x
topology: tpu7x:2x2x1
jax: 0.10.0
libtpu: 0.0.40
codegen_flags: <defaults>
</compile_context>

<pallas_src>
import functools
import math

import jax
import jax.numpy as jnp
from jax.experimental import pallas as pl
from jax.experimental.pallas import tpu as pltpu


def _encoder_stack_kernel(x_ref,
                          wqkv_ref, bqkv_ref, wo_ref, bo_ref,
                          gamma_ref, beta_ref,
                          w1_ref, b1_ref, w2_ref, b2_ref,
                          o_ref, *, heads, q_chunk):
    """One EncoderLayer for one batch element.  grid = (batch, layer); the
    activation is resident in `o_ref` across the (inner) layer axis."""
    layer = pl.program_id(1)

    # Layer 0: seed the resident activation block with the kernel input.
    @pl.when(layer == 0)
    def _():
        o_ref[0] = x_ref[0]

    act = o_ref[0].astype(jnp.float32)            # (S, H): prev-layer output
    S, H = act.shape
    dh = H // heads
    scale = 1.0 / math.sqrt(dh)

    gamma = gamma_ref[0].astype(jnp.float32)      # (1, H)
    beta = beta_ref[0].astype(jnp.float32)        # (1, H)

    def layernorm(t):                             # f32 stats, shared gamma/beta
        mu = jnp.mean(t, axis=-1, keepdims=True)
        var = jnp.mean((t - mu) ** 2, axis=-1, keepdims=True)
        return (t - mu) * jax.lax.rsqrt(var + 1e-5) * gamma + beta

    def linear(t, w_ref, b_ref):                  # bf16 MXU, f32 accumulation
        out = jnp.dot(t.astype(jnp.bfloat16), w_ref[0],
                      preferred_element_type=jnp.float32)
        return out + b_ref[0].astype(jnp.float32)

    # ---- fused Q/K/V projection: one (S, H) x (H, 3H) MXU pass ----
    qkv = linear(act, wqkv_ref, bqkv_ref)         # (S, 3H) f32
    q = qkv[:, 0 * H:1 * H]
    k = qkv[:, 1 * H:2 * H]
    v = qkv[:, 2 * H:3 * H]

    def head_major(t):                            # (rows, H) -> (heads, rows, dh)
        # Static per-head lane slices (aligned for dh % 128 == 0); the actual
        # attention matmuls below are fully batched over heads.
        return jnp.stack([t[:, h * dh:(h + 1) * dh] for h in range(heads)],
                         axis=0).astype(jnp.bfloat16)

    kh = head_major(k)                            # (heads, S, dh) bf16
    vh = head_major(v)                            # (heads, S, dh) bf16

    # ---- per-query-row-chunk attention + FFN (bounds (tS,S) and (tS,F)) ----
    n_chunks = (S + q_chunk - 1) // q_chunk       # static Python int
    for c in range(n_chunks):
        r0 = c * q_chunk
        r1 = min(r0 + q_chunk, S)

        qh = head_major(q[r0:r1])                 # (heads, tS, dh) bf16
        scores = jnp.einsum("hqd,hkd->hqk", qh, kh,
                            preferred_element_type=jnp.float32) * scale
        scores = scores - jnp.max(scores, axis=-1, keepdims=True)
        p = jnp.exp(scores)
        p = p * pl.reciprocal(jnp.sum(p, axis=-1, keepdims=True), approx=True)
        ctx = jnp.einsum("hqk,hkd->hqd", p.astype(jnp.bfloat16), vh,
                         preferred_element_type=jnp.float32)  # (heads, tS, dh)
        ctx = jnp.concatenate([ctx[h] for h in range(heads)], axis=-1)

        attn = linear(ctx, wo_ref, bo_ref)        # output projection (tS, H)
        # dropout(p=0.1) == identity in eval; residual + shared LayerNorm.
        h1 = layernorm(act[r0:r1] + attn)

        # position-wise feed-forward
        ff = jnp.maximum(linear(h1, w1_ref, b1_ref), 0.0)
        ff = linear(ff, w2_ref, b2_ref)
        h2 = layernorm(h1 + ff)

        o_ref[0, r0:r1, :] = h2.astype(o_ref.dtype)


def encoder_pallas(x, layer_params, heads, q_chunk=256):
    """Encoder.forward: all layers fused into a single pallas_call."""
    B, S, H = x.shape
    L = len(layer_params)
    wdt = jnp.bfloat16                            # MXU operand dtype

    def stack(name, dtype):
        return jnp.stack([p[name] for p in layer_params]).astype(dtype)

    wqkv = jnp.stack([jnp.concatenate([p["wq"], p["wk"], p["wv"]], axis=1)
                      for p in layer_params]).astype(wdt)          # (L, H, 3H)
    bqkv = jnp.stack([jnp.concatenate([p["bq"], p["bk"], p["bv"]], axis=1)
                      for p in layer_params]).astype(jnp.float32)  # (L, 1, 3H)
    weights = [
        wqkv, bqkv,
        stack("wo", wdt), stack("bo", jnp.float32),
        stack("gamma", jnp.float32), stack("beta", jnp.float32),
        stack("w1", wdt), stack("b1", jnp.float32),
        stack("w2", wdt), stack("b2", jnp.float32),
    ]

    def wspec(arr):
        # One layer's slice per grid step; with the layer axis innermost the
        # pipeline prefetches layer l+1's weights while layer l computes.
        return pl.BlockSpec((1,) + arr.shape[1:], lambda b, l: (l, 0, 0))

    kernel = functools.partial(_encoder_stack_kernel, heads=heads,
                               q_chunk=min(q_chunk, S))

    return pl.pallas_call(
        kernel,
        out_shape=jax.ShapeDtypeStruct((B, S, H), x.dtype),
        grid_spec=pltpu.PrefetchScalarGridSpec(
            num_scalar_prefetch=0,
            grid=(B, L),                          # layer axis innermost
            in_specs=[pl.BlockSpec((1, S, H), lambda b, l: (b, 0, 0))]
            + [wspec(w) for w in weights],
            out_specs=pl.BlockSpec((1, S, H), lambda b, l: (b, 0, 0)),
        ),
        compiler_params=pltpu.CompilerParams(
            dimension_semantics=("parallel", "arbitrary"),
            vmem_limit_bytes=64 * 1024 * 1024,
        ),
    )(x, *weights)


# ----------------------- deterministic parameter init -----------------------
def init_layer_params(key, hidden, ffn_hidden):
    ks = jax.random.split(key, 14)
    s_h = 1.0 / math.sqrt(hidden)
    s_f = 1.0 / math.sqrt(ffn_hidden)
    u = jax.random.uniform
    return {
        "wq": u(ks[0], (hidden, hidden), jnp.float32, -s_h, s_h),
        "bq": u(ks[1], (1, hidden), jnp.float32, -s_h, s_h),
        "wk": u(ks[2], (hidden, hidden), jnp.float32, -s_h, s_h),
        "bk": u(ks[3], (1, hidden), jnp.float32, -s_h, s_h),
        "wv": u(ks[4], (hidden, hidden), jnp.float32, -s_h, s_h),
        "bv": u(ks[5], (1, hidden), jnp.float32, -s_h, s_h),
        "wo": u(ks[6], (hidden, hidden), jnp.float32, -s_h, s_h),
        "bo": u(ks[7], (1, hidden), jnp.float32, -s_h, s_h),
        "gamma": 1.0 + 0.1 * jax.random.normal(ks[8], (1, hidden), jnp.float32),
        "beta": 0.1 * jax.random.normal(ks[9], (1, hidden), jnp.float32),
        "w1": u(ks[10], (hidden, ffn_hidden), jnp.float32, -s_h, s_h),
        "b1": u(ks[11], (1, ffn_hidden), jnp.float32, -s_h, s_h),
        "w2": u(ks[12], (ffn_hidden, hidden), jnp.float32, -s_f, s_f),
        "b2": u(ks[13], (1, hidden), jnp.float32, -s_f, s_f),
    }


# --------------------------- pure-JAX reference ------------------------------
def encoder_ref(x, layer_params, heads):
    def ln(v, g, b):
        mu = jnp.mean(v, -1, keepdims=True)
        var = jnp.mean((v - mu) ** 2, -1, keepdims=True)
        return (v - mu) * jax.lax.rsqrt(var + 1e-5) * g + b

    for p in layer_params:
        B, S, H = x.shape
        dh = H // heads
        q = x @ p["wq"] + p["bq"]
        k = x @ p["wk"] + p["bk"]
        v = x @ p["wv"] + p["bv"]
        q = q.reshape(B, S, heads, dh).transpose(0, 2, 1, 3)
        k = k.reshape(B, S, heads, dh).transpose(0, 2, 1, 3)
        v = v.reshape(B, S, heads, dh).transpose(0, 2, 1, 3)
        s = jnp.einsum("bhqd,bhkd->bhqk", q, k) / math.sqrt(dh)
        a = jax.nn.softmax(s, axis=-1)
        o = jnp.einsum("bhqk,bhkd->bhqd", a, v).transpose(0, 2, 1, 3).reshape(B, S, H)
        o = o @ p["wo"] + p["bo"]
        h1 = ln(x + o, p["gamma"], p["beta"])
        f = jnp.maximum(h1 @ p["w1"] + p["b1"], 0.0) @ p["w2"] + p["b2"]
        x = ln(h1 + f, p["gamma"], p["beta"])
    return x


if __name__ == "__main__":
    # Small shapes consistent with the module: (batch, seq, hidden)
    batch, seq, hidden, ffn_hidden, heads, num_layers = 2, 8, 32, 64, 4, 2

    key = jax.random.PRNGKey(0)
    kx, *layer_keys = jax.random.split(key, num_layers + 1)
    x = jax.random.normal(kx, (batch, seq, hidden), jnp.float32)
    layer_params = [init_layer_params(k, hidden, ffn_hidden) for k in layer_keys]

    out = encoder_pallas(x, layer_params, heads)
    out = jax.block_until_ready(out)

    ref = encoder_ref(x, layer_params, heads)
    assert out.shape == (batch, seq, hidden)
    # bf16 MXU inputs (with f32 accumulation) vs the pure-f32 reference -> the
    # original 1e-4 tolerance is loosened accordingly.
    max_diff = float(jnp.max(jnp.abs(out - ref)))
    assert jnp.allclose(out, ref, atol=5e-2, rtol=5e-2), (
        f"mismatch vs reference, max abs diff = {max_diff}")
    print("KERNEL_OK")
</pallas_src>

<mosaic_0001>
module attributes {stable_mosaic.version = 11 : i64} {
  func.func @_encoder_stack_kernel(%arg0: i32, %arg1: i32, %arg2: memref<1x8x32xf32, #tpu.memory_space<vmem>>, %arg3: memref<1x32x96xbf16, #tpu.memory_space<vmem>>, %arg4: memref<1x1x96xf32, #tpu.memory_space<vmem>>, %arg5: memref<1x32x32xbf16, #tpu.memory_space<vmem>>, %arg6: memref<1x1x32xf32, #tpu.memory_space<vmem>>, %arg7: memref<1x1x32xf32, #tpu.memory_space<vmem>>, %arg8: memref<1x1x32xf32, #tpu.memory_space<vmem>>, %arg9: memref<1x32x64xbf16, #tpu.memory_space<vmem>>, %arg10: memref<1x1x64xf32, #tpu.memory_space<vmem>>, %arg11: memref<1x64x32xbf16, #tpu.memory_space<vmem>>, %arg12: memref<1x1x32xf32, #tpu.memory_space<vmem>>, %arg13: memref<1x8x32xf32, #tpu.memory_space<vmem>>) attributes {dimension_semantics = [#tpu.dimension_semantics<parallel>, #tpu.dimension_semantics<arbitrary>], iteration_bounds = array<i64: 2, 2>, scalar_prefetch = 0 : i64, scratch_operands = 0 : i64, tpu.core_type = #tpu.core_type<tc>, window_params = [{transform_indices = @transform_0, window_bounds = array<i64: 1, 8, 32>}, {transform_indices = @transform_1, window_bounds = array<i64: 1, 32, 96>}, {transform_indices = @transform_2, window_bounds = array<i64: 1, 1, 96>}, {transform_indices = @transform_3, window_bounds = array<i64: 1, 32, 32>}, {transform_indices = @transform_4, window_bounds = array<i64: 1, 1, 32>}, {transform_indices = @transform_5, window_bounds = array<i64: 1, 1, 32>}, {transform_indices = @transform_6, window_bounds = array<i64: 1, 1, 32>}, {transform_indices = @transform_7, window_bounds = array<i64: 1, 32, 64>}, {transform_indices = @transform_8, window_bounds = array<i64: 1, 1, 64>}, {transform_indices = @transform_9, window_bounds = array<i64: 1, 64, 32>}, {transform_indices = @transform_10, window_bounds = array<i64: 1, 1, 32>}, {transform_indices = @transform_11, window_bounds = array<i64: 1, 8, 32>}]} {
    %c0_i32 = arith.constant 0 : i32
    %0 = arith.cmpi eq, %arg1, %c0_i32 : i32
    %1 = arith.extui %0 : i1 to i32
    %c0_i32_0 = arith.constant 0 : i32
    %2 = arith.cmpi ne, %1, %c0_i32_0 : i32
    scf.if %2 {
      %c0_55 = arith.constant 0 : index
      %c0_56 = arith.constant 0 : index
      %c0_57 = arith.constant 0 : index
      %149 = vector.load %arg2[%c0_55, %c0_56, %c0_57] : memref<1x8x32xf32, #tpu.memory_space<vmem>>, vector<1x8x32xf32>
      %150 = vector.shape_cast %149 : vector<1x8x32xf32> to vector<8x32xf32>
      %c0_58 = arith.constant 0 : index
      %c0_59 = arith.constant 0 : index
      %c0_60 = arith.constant 0 : index
      %151 = vector.load %arg13[%c0_58, %c0_59, %c0_60] : memref<1x8x32xf32, #tpu.memory_space<vmem>>, vector<1x8x32xf32>
      %152 = vector.shape_cast %151 : vector<1x8x32xf32> to vector<8x32xf32>
      %153 = vector.shape_cast %150 : vector<8x32xf32> to vector<1x8x32xf32>
      tpu.vector_store %arg13[%c0_58, %c0_59, %c0_60], %153 {strides = array<i32>} : memref<1x8x32xf32, #tpu.memory_space<vmem>>, vector<1x8x32xf32>,
    } else {
    }
    %c0 = arith.constant 0 : index
    %c0_1 = arith.constant 0 : index
    %c0_2 = arith.constant 0 : index
    %3 = vector.load %arg13[%c0, %c0_1, %c0_2] : memref<1x8x32xf32, #tpu.memory_space<vmem>>, vector<1x8x32xf32>
    %4 = vector.shape_cast %3 : vector<1x8x32xf32> to vector<8x32xf32>
    %c0_3 = arith.constant 0 : index
    %c0_4 = arith.constant 0 : index
    %c0_5 = arith.constant 0 : index
    %5 = vector.load %arg7[%c0_3, %c0_4, %c0_5] : memref<1x1x32xf32, #tpu.memory_space<vmem>>, vector<1x1x32xf32>
    %6 = vector.shape_cast %5 : vector<1x1x32xf32> to vector<1x32xf32>
    %c0_6 = arith.constant 0 : index
    %c0_7 = arith.constant 0 : index
    %c0_8 = arith.constant 0 : index
    %7 = vector.load %arg8[%c0_6, %c0_7, %c0_8] : memref<1x1x32xf32, #tpu.memory_space<vmem>>, vector<1x1x32xf32>
    %8 = vector.shape_cast %7 : vector<1x1x32xf32> to vector<1x32xf32>
    %9 = arith.truncf %4 : vector<8x32xf32> to vector<8x32xbf16>
    %c0_9 = arith.constant 0 : index
    %c0_10 = arith.constant 0 : index
    %c0_11 = arith.constant 0 : index
    %10 = vector.load %arg3[%c0_9, %c0_10, %c0_11] : memref<1x32x96xbf16, #tpu.memory_space<vmem>>, vector<1x32x96xbf16>
    %11 = vector.shape_cast %10 : vector<1x32x96xbf16> to vector<32x96xbf16>
    %cst = arith.constant dense<0.000000e+00> : vector<8x96xf32>
    %12 = tpu.matmul %9, %11, %cst {dimension_numbers = #tpu.dot_dimension_numbers<[1], [0], [0], [1], [0, 0, 1, 1], [], []>} : vector<8x32xbf16>, vector<32x96xbf16>, vector<8x96xf32> -> vector<8x96xf32>
    %c0_12 = arith.constant 0 : index
    %c0_13 = arith.constant 0 : index
    %c0_14 = arith.constant 0 : index
    %13 = vector.load %arg4[%c0_12, %c0_13, %c0_14] : memref<1x1x96xf32, #tpu.memory_space<vmem>>, vector<1x1x96xf32>
    %14 = vector.shape_cast %13 : vector<1x1x96xf32> to vector<1x96xf32>
    %15 = vector.broadcast %14 : vector<1x96xf32> to vector<8x96xf32>
    %16 = arith.addf %12, %15 : vector<8x96xf32>
    %17 = vector.extract_strided_slice %16 {offsets = [0, 0], sizes = [8, 32], strides = [1, 1]} : vector<8x96xf32> to vector<8x32xf32>
    %18 = vector.extract_strided_slice %16 {offsets = [0, 32], sizes = [8, 32], strides = [1, 1]} : vector<8x96xf32> to vector<8x32xf32>
    %19 = vector.extract_strided_slice %16 {offsets = [0, 64], sizes = [8, 32], strides = [1, 1]} : vector<8x96xf32> to vector<8x32xf32>
    %20 = vector.extract_strided_slice %18 {offsets = [0, 0], sizes = [8, 8], strides = [1, 1]} : vector<8x32xf32> to vector<8x8xf32>
    %21 = vector.extract_strided_slice %18 {offsets = [0, 8], sizes = [8, 8], strides = [1, 1]} : vector<8x32xf32> to vector<8x8xf32>
    %22 = vector.extract_strided_slice %18 {offsets = [0, 16], sizes = [8, 8], strides = [1, 1]} : vector<8x32xf32> to vector<8x8xf32>
    %23 = vector.extract_strided_slice %18 {offsets = [0, 24], sizes = [8, 8], strides = [1, 1]} : vector<8x32xf32> to vector<8x8xf32>
    %24 = vector.shape_cast %20 : vector<8x8xf32> to vector<1x8x8xf32>
    %25 = vector.shape_cast %21 : vector<8x8xf32> to vector<1x8x8xf32>
    %26 = vector.shape_cast %22 : vector<8x8xf32> to vector<1x8x8xf32>
    %27 = vector.shape_cast %23 : vector<8x8xf32> to vector<1x8x8xf32>
    %28 = tpu.concatenate %24, %25, %26, %27 in 0 : vector<1x8x8xf32>, vector<1x8x8xf32>, vector<1x8x8xf32>, vector<1x8x8xf32> -> vector<4x8x8xf32>
    %29 = arith.truncf %28 : vector<4x8x8xf32> to vector<4x8x8xbf16>
    %30 = vector.extract_strided_slice %19 {offsets = [0, 0], sizes = [8, 8], strides = [1, 1]} : vector<8x32xf32> to vector<8x8xf32>
    %31 = vector.extract_strided_slice %19 {offsets = [0, 8], sizes = [8, 8], strides = [1, 1]} : vector<8x32xf32> to vector<8x8xf32>
    %32 = vector.extract_strided_slice %19 {offsets = [0, 16], sizes = [8, 8], strides = [1, 1]} : vector<8x32xf32> to vector<8x8xf32>
    %33 = vector.extract_strided_slice %19 {offsets = [0, 24], sizes = [8, 8], strides = [1, 1]} : vector<8x32xf32> to vector<8x8xf32>
    %34 = vector.shape_cast %30 : vector<8x8xf32> to vector<1x8x8xf32>
    %35 = vector.shape_cast %31 : vector<8x8xf32> to vector<1x8x8xf32>
    %36 = vector.shape_cast %32 : vector<8x8xf32> to vector<1x8x8xf32>
    %37 = vector.shape_cast %33 : vector<8x8xf32> to vector<1x8x8xf32>
    %38 = tpu.concatenate %34, %35, %36, %37 in 0 : vector<1x8x8xf32>, vector<1x8x8xf32>, vector<1x8x8xf32>, vector<1x8x8xf32> -> vector<4x8x8xf32>
    %39 = arith.truncf %38 : vector<4x8x8xf32> to vector<4x8x8xbf16>
    %40 = vector.extract_strided_slice %17 {offsets = [0, 0], sizes = [8, 8], strides = [1, 1]} : vector<8x32xf32> to vector<8x8xf32>
    %41 = vector.extract_strided_slice %17 {offsets = [0, 8], sizes = [8, 8], strides = [1, 1]} : vector<8x32xf32> to vector<8x8xf32>
    %42 = vector.extract_strided_slice %17 {offsets = [0, 16], sizes = [8, 8], strides = [1, 1]} : vector<8x32xf32> to vector<8x8xf32>
    %43 = vector.extract_strided_slice %17 {offsets = [0, 24], sizes = [8, 8], strides = [1, 1]} : vector<8x32xf32> to vector<8x8xf32>
    %44 = vector.shape_cast %40 : vector<8x8xf32> to vector<1x8x8xf32>
    %45 = vector.shape_cast %41 : vector<8x8xf32> to vector<1x8x8xf32>
    %46 = vector.shape_cast %42 : vector<8x8xf32> to vector<1x8x8xf32>
    %47 = vector.shape_cast %43 : vector<8x8xf32> to vector<1x8x8xf32>
    %48 = tpu.concatenate %44, %45, %46, %47 in 0 : vector<1x8x8xf32>, vector<1x8x8xf32>, vector<1x8x8xf32>, vector<1x8x8xf32> -> vector<4x8x8xf32>
    %49 = arith.truncf %48 : vector<4x8x8xf32> to vector<4x8x8xbf16>
    "tpu.trace_start"() <{level = 10 : i32, message = "hqd,hkd->hqk"}> : () -> ()
    %cst_15 = arith.constant dense<0.000000e+00> : vector<4x8x8xf32>
    %50 = tpu.matmul %49, %29, %cst_15 {dimension_numbers = #tpu.dot_dimension_numbers<[2], [2], [1], [1], [0, 0, 0, 1, 1, 1], [0], [0]>} : vector<4x8x8xbf16>, vector<4x8x8xbf16>, vector<4x8x8xf32> -> vector<4x8x8xf32>
    "tpu.trace_stop"() : () -> ()
    %cst_16 = arith.constant 0.353553385 : f32
    %51 = vector.broadcast %cst_16 : f32 to vector<4x8x8xf32>
    %52 = arith.mulf %50, %51 : vector<4x8x8xf32>
    %cst_17 = arith.constant dense<0xFF800000> : vector<4x8xf32>
    %53 = vector.multi_reduction <maximumf>, %52, %cst_17 [2] : vector<4x8x8xf32> to vector<4x8xf32>
    %54 = vector.shape_cast %53 : vector<4x8xf32> to vector<4x8x1xf32>
    %55 = vector.broadcast %54 : vector<4x8x1xf32> to vector<4x8x8xf32>
    %56 = arith.subf %52, %55 : vector<4x8x8xf32>
    %57 = math.exp %56 : vector<4x8x8xf32>
    %cst_18 = arith.constant dense<0.000000e+00> : vector<4x8xf32>
    %58 = vector.multi_reduction <add>, %57, %cst_18 [2] : vector<4x8x8xf32> to vector<4x8xf32>
    %59 = vector.shape_cast %58 : vector<4x8xf32> to vector<4x8x1xf32>
    %60 = tpu.reciprocal %59 {approx = true} : vector<4x8x1xf32> -> vector<4x8x1xf32>
    %61 = vector.broadcast %60 : vector<4x8x1xf32> to vector<4x8x8xf32>
    %62 = arith.mulf %57, %61 : vector<4x8x8xf32>
    %63 = arith.truncf %62 : vector<4x8x8xf32> to vector<4x8x8xbf16>
    "tpu.trace_start"() <{level = 10 : i32, message = "hqk,hkd->hqd"}> : () -> ()
    %cst_19 = arith.constant dense<0.000000e+00> : vector<4x8x8xf32>
    %64 = tpu.matmul %63, %39, %cst_19 {dimension_numbers = #tpu.dot_dimension_numbers<[2], [1], [1], [2], [0, 0, 0, 1, 1, 2], [0], [0]>} : vector<4x8x8xbf16>, vector<4x8x8xbf16>, vector<4x8x8xf32> -> vector<4x8x8xf32>
    "tpu.trace_stop"() : () -> ()
    %65 = vector.extract_strided_slice %64 {offsets = [0, 0, 0], sizes = [1, 8, 8], strides = [1, 1, 1]} : vector<4x8x8xf32> to vector<1x8x8xf32>
    %66 = vector.shape_cast %65 : vector<1x8x8xf32> to vector<8x8xf32>
    %67 = vector.extract_strided_slice %64 {offsets = [1, 0, 0], sizes = [1, 8, 8], strides = [1, 1, 1]} : vector<4x8x8xf32> to vector<1x8x8xf32>
    %68 = vector.shape_cast %67 : vector<1x8x8xf32> to vector<8x8xf32>
    %69 = vector.extract_strided_slice %64 {offsets = [2, 0, 0], sizes = [1, 8, 8], strides = [1, 1, 1]} : vector<4x8x8xf32> to vector<1x8x8xf32>
    %70 = vector.shape_cast %69 : vector<1x8x8xf32> to vector<8x8xf32>
    %71 = vector.extract_strided_slice %64 {offsets = [3, 0, 0], sizes = [1, 8, 8], strides = [1, 1, 1]} : vector<4x8x8xf32> to vector<1x8x8xf32>
    %72 = vector.shape_cast %71 : vector<1x8x8xf32> to vector<8x8xf32>
    %73 = tpu.concatenate %66, %68, %70, %72 in 1 : vector<8x8xf32>, vector<8x8xf32>, vector<8x8xf32>, vector<8x8xf32> -> vector<8x32xf32>
    %74 = arith.truncf %73 : vector<8x32xf32> to vector<8x32xbf16>
    %c0_20 = arith.constant 0 : index
    %c0_21 = arith.constant 0 : index
    %c0_22 = arith.constant 0 : index
    %75 = vector.load %arg5[%c0_20, %c0_21, %c0_22] : memref<1x32x32xbf16, #tpu.memory_space<vmem>>, vector<1x32x32xbf16>
    %76 = vector.shape_cast %75 : vector<1x32x32xbf16> to vector<32x32xbf16>
    %cst_23 = arith.constant dense<0.000000e+00> : vector<8x32xf32>
    %77 = tpu.matmul %74, %76, %cst_23 {dimension_numbers = #tpu.dot_dimension_numbers<[1], [0], [0], [1], [0, 0, 1, 1], [], []>} : vector<8x32xbf16>, vector<32x32xbf16>, vector<8x32xf32> -> vector<8x32xf32>
    %c0_24 = arith.constant 0 : index
    %c0_25 = arith.constant 0 : index
    %c0_26 = arith.constant 0 : index
    %78 = vector.load %arg6[%c0_24, %c0_25, %c0_26] : memref<1x1x32xf32, #tpu.memory_space<vmem>>, vector<1x1x32xf32>
    %79 = vector.shape_cast %78 : vector<1x1x32xf32> to vector<1x32xf32>
    %80 = vector.broadcast %79 : vector<1x32xf32> to vector<8x32xf32>
    %81 = arith.addf %77, %80 : vector<8x32xf32>
    %82 = arith.addf %4, %81 : vector<8x32xf32>
    %cst_27 = arith.constant dense<0.000000e+00> : vector<8xf32>
    %83 = vector.multi_reduction <add>, %82, %cst_27 [1] : vector<8x32xf32> to vector<8xf32>
    %84 = vector.shape_cast %83 : vector<8xf32> to vector<8x1xf32>
    %cst_28 = arith.constant 3.200000e+01 : f32
    %85 = vector.broadcast %cst_28 : f32 to vector<8x1xf32>
    %86 = arith.divf %84, %85 : vector<8x1xf32>
    %87 = vector.broadcast %86 : vector<8x1xf32> to vector<8x32xf32>
    %88 = arith.subf %82, %87 : vector<8x32xf32>
    %89 = arith.mulf %88, %88 : vector<8x32xf32>
    %cst_29 = arith.constant dense<0.000000e+00> : vector<8xf32>
    %90 = vector.multi_reduction <add>, %89, %cst_29 [1] : vector<8x32xf32> to vector<8xf32>
    %91 = vector.shape_cast %90 : vector<8xf32> to vector<8x1xf32>
    %cst_30 = arith.constant 3.200000e+01 : f32
    %92 = vector.broadcast %cst_30 : f32 to vector<8x1xf32>
    %93 = arith.divf %91, %92 : vector<8x1xf32>
    %94 = vector.broadcast %86 : vector<8x1xf32> to vector<8x32xf32>
    %95 = arith.subf %82, %94 : vector<8x32xf32>
    %cst_31 = arith.constant 9.99999974E-6 : f32
    %96 = vector.broadcast %cst_31 : f32 to vector<8x1xf32>
    %97 = arith.addf %93, %96 : vector<8x1xf32>
    %98 = math.rsqrt %97 : vector<8x1xf32>
    %99 = vector.broadcast %98 : vector<8x1xf32> to vector<8x32xf32>
    %100 = arith.mulf %95, %99 : vector<8x32xf32>
    %101 = vector.broadcast %6 : vector<1x32xf32> to vector<8x32xf32>
    %102 = arith.mulf %100, %101 : vector<8x32xf32>
    %103 = vector.broadcast %8 : vector<1x32xf32> to vector<8x32xf32>
    %104 = arith.addf %102, %103 : vector<8x32xf32>
    %105 = arith.truncf %104 : vector<8x32xf32> to vector<8x32xbf16>
    %c0_32 = arith.constant 0 : index
    %c0_33 = arith.constant 0 : index
    %c0_34 = arith.constant 0 : index
    %106 = vector.load %arg9[%c0_32, %c0_33, %c0_34] : memref<1x32x64xbf16, #tpu.memory_space<vmem>>, vector<1x32x64xbf16>
    %107 = vector.shape_cast %106 : vector<1x32x64xbf16> to vector<32x64xbf16>
    %cst_35 = arith.constant dense<0.000000e+00> : vector<8x64xf32>
    %108 = tpu.matmul %105, %107, %cst_35 {dimension_numbers = #tpu.dot_dimension_numbers<[1], [0], [0], [1], [0, 0, 1, 1], [], []>} : vector<8x32xbf16>, vector<32x64xbf16>, vector<8x64xf32> -> vector<8x64xf32>
    %c0_36 = arith.constant 0 : index
    %c0_37 = arith.constant 0 : index
    %c0_38 = arith.constant 0 : index
    %109 = vector.load %arg10[%c0_36, %c0_37, %c0_38] : memref<1x1x64xf32, #tpu.memory_space<vmem>>, vector<1x1x64xf32>
    %110 = vector.shape_cast %109 : vector<1x1x64xf32> to vector<1x64xf32>
    %111 = vector.broadcast %110 : vector<1x64xf32> to vector<8x64xf32>
    %112 = arith.addf %108, %111 : vector<8x64xf32>
    %cst_39 = arith.constant 0.000000e+00 : f32
    %113 = vector.broadcast %cst_39 : f32 to vector<8x64xf32>
    %114 = arith.maximumf %112, %113 : vector<8x64xf32>
    %115 = arith.truncf %114 : vector<8x64xf32> to vector<8x64xbf16>
    %c0_40 = arith.constant 0 : index
    %c0_41 = arith.constant 0 : index
    %c0_42 = arith.constant 0 : index
    %116 = vector.load %arg11[%c0_40, %c0_41, %c0_42] : memref<1x64x32xbf16, #tpu.memory_space<vmem>>, vector<1x64x32xbf16>
    %117 = vector.shape_cast %116 : vector<1x64x32xbf16> to vector<64x32xbf16>
    %cst_43 = arith.constant dense<0.000000e+00> : vector<8x32xf32>
    %118 = tpu.matmul %115, %117, %cst_43 {dimension_numbers = #tpu.dot_dimension_numbers<[1], [0], [0], [1], [0, 0, 1, 1], [], []>} : vector<8x64xbf16>, vector<64x32xbf16>, vector<8x32xf32> -> vector<8x32xf32>
    %c0_44 = arith.constant 0 : index
    %c0_45 = arith.constant 0 : index
    %c0_46 = arith.constant 0 : index
    %119 = vector.load %arg12[%c0_44, %c0_45, %c0_46] : memref<1x1x32xf32, #tpu.memory_space<vmem>>, vector<1x1x32xf32>
    %120 = vector.shape_cast %119 : vector<1x1x32xf32> to vector<1x32xf32>
    %121 = vector.broadcast %120 : vector<1x32xf32> to vector<8x32xf32>
    %122 = arith.addf %118, %121 : vector<8x32xf32>
    %123 = arith.addf %104, %122 : vector<8x32xf32>
    %cst_47 = arith.constant dense<0.000000e+00> : vector<8xf32>
    %124 = vector.multi_reduction <add>, %123, %cst_47 [1] : vector<8x32xf32> to vector<8xf32>
    %125 = vector.shape_cast %124 : vector<8xf32> to vector<8x1xf32>
    %cst_48 = arith.constant 3.200000e+01 : f32
    %126 = vector.broadcast %cst_48 : f32 to vector<8x1xf32>
    %127 = arith.divf %125, %126 : vector<8x1xf32>
    %128 = vector.broadcast %127 : vector<8x1xf32> to vector<8x32xf32>
    %129 = arith.subf %123, %128 : vector<8x32xf32>
    %130 = arith.mulf %129, %129 : vector<8x32xf32>
    %cst_49 = arith.constant dense<0.000000e+00> : vector<8xf32>
    %131 = vector.multi_reduction <add>, %130, %cst_49 [1] : vector<8x32xf32> to vector<8xf32>
    %132 = vector.shape_cast %131 : vector<8xf32> to vector<8x1xf32>
    %cst_50 = arith.constant 3.200000e+01 : f32
    %133 = vector.broadcast %cst_50 : f32 to vector<8x1xf32>
    %134 = arith.divf %132, %133 : vector<8x1xf32>
    %135 = vector.broadcast %127 : vector<8x1xf32> to vector<8x32xf32>
    %136 = arith.subf %123, %135 : vector<8x32xf32>
    %cst_51 = arith.constant 9.99999974E-6 : f32
    %137 = vector.broadcast %cst_51 : f32 to vector<8x1xf32>
    %138 = arith.addf %134, %137 : vector<8x1xf32>
    %139 = math.rsqrt %138 : vector<8x1xf32>
    %140 = vector.broadcast %139 : vector<8x1xf32> to vector<8x32xf32>
    %141 = arith.mulf %136, %140 : vector<8x32xf32>
    %142 = vector.broadcast %6 : vector<1x32xf32> to vector<8x32xf32>
    %143 = arith.mulf %141, %142 : vector<8x32xf32>
    %144 = vector.broadcast %8 : vector<1x32xf32> to vector<8x32xf32>
    %145 = arith.addf %143, %144 : vector<8x32xf32>
    %c0_52 = arith.constant 0 : index
    %c0_53 = arith.constant 0 : index
    %c0_54 = arith.constant 0 : index
    %146 = vector.load %arg13[%c0_52, %c0_53, %c0_54] : memref<1x8x32xf32, #tpu.memory_space<vmem>>, vector<1x8x32xf32>
    %147 = vector.shape_cast %146 : vector<1x8x32xf32> to vector<8x32xf32>
    %148 = vector.shape_cast %145 : vector<8x32xf32> to vector<1x8x32xf32>
    tpu.vector_store %arg13[%c0_52, %c0_53, %c0_54], %148 {strides = array<i32>} : memref<1x8x32xf32, #tpu.memory_space<vmem>>, vector<1x8x32xf32>,
    return
  }
  func.func @transform_0(%arg0: i32, %arg1: i32) -> (i32, i32, i32) {
    %c0_i32 = arith.constant 0 : i32
    %c0_i32_0 = arith.constant 0 : i32
    %c0_i32_1 = arith.constant 0 : i32
    return %arg0, %c0_i32, %c0_i32_0 : i32, i32, i32
  }
  func.func @transform_1(%arg0: i32, %arg1: i32) -> (i32, i32, i32) {
    %c0_i32 = arith.constant 0 : i32
    %c0_i32_0 = arith.constant 0 : i32
    %c0_i32_1 = arith.constant 0 : i32
    return %arg1, %c0_i32, %c0_i32_0 : i32, i32, i32
  }
  func.func @transform_2(%arg0: i32, %arg1: i32) -> (i32, i32, i32) {
    %c0_i32 = arith.constant 0 : i32
    %c0_i32_0 = arith.constant 0 : i32
    %c0_i32_1 = arith.constant 0 : i32
    return %arg1, %c0_i32, %c0_i32_0 : i32, i32, i32
  }
  func.func @transform_3(%arg0: i32, %arg1: i32) -> (i32, i32, i32) {
    %c0_i32 = arith.constant 0 : i32
    %c0_i32_0 = arith.constant 0 : i32
    %c0_i32_1 = arith.constant 0 : i32
    return %arg1, %c0_i32, %c0_i32_0 : i32, i32, i32
  }
  func.func @transform_4(%arg0: i32, %arg1: i32) -> (i32, i32, i32) {
    %c0_i32 = arith.constant 0 : i32
    %c0_i32_0 = arith.constant 0 : i32
    %c0_i32_1 = arith.constant 0 : i32
    return %arg1, %c0_i32, %c0_i32_0 : i32, i32, i32
  }
  func.func @transform_5(%arg0: i32, %arg1: i32) -> (i32, i32, i32) {
    %c0_i32 = arith.constant 0 : i32
    %c0_i32_0 = arith.constant 0 : i32
    %c0_i32_1 = arith.constant 0 : i32
    return %arg1, %c0_i32, %c0_i32_0 : i32, i32, i32
  }
  func.func @transform_6(%arg0: i32, %arg1: i32) -> (i32, i32, i32) {
    %c0_i32 = arith.constant 0 : i32
    %c0_i32_0 = arith.constant 0 : i32
    %c0_i32_1 = arith.constant 0 : i32
    return %arg1, %c0_i32, %c0_i32_0 : i32, i32, i32
  }
  func.func @transform_7(%arg0: i32, %arg1: i32) -> (i32, i32, i32) {
    %c0_i32 = arith.constant 0 : i32
    %c0_i32_0 = arith.constant 0 : i32
    %c0_i32_1 = arith.constant 0 : i32
    return %arg1, %c0_i32, %c0_i32_0 : i32, i32, i32
  }
  func.func @transform_8(%arg0: i32, %arg1: i32) -> (i32, i32, i32) {
    %c0_i32 = arith.constant 0 : i32
    %c0_i32_0 = arith.constant 0 : i32
    %c0_i32_1 = arith.constant 0 : i32
    return %arg1, %c0_i32, %c0_i32_0 : i32, i32, i32
  }
  func.func @transform_9(%arg0: i32, %arg1: i32) -> (i32, i32, i32) {
    %c0_i32 = arith.constant 0 : i32
    %c0_i32_0 = arith.constant 0 : i32
    %c0_i32_1 = arith.constant 0 : i32
    return %arg1, %c0_i32, %c0_i32_0 : i32, i32, i32
  }
  func.func @transform_10(%arg0: i32, %arg1: i32) -> (i32, i32, i32) {
    %c0_i32 = arith.constant 0 : i32
    %c0_i32_0 = arith.constant 0 : i32
    %c0_i32_1 = arith.constant 0 : i32
    return %arg1, %c0_i32, %c0_i32_0 : i32, i32, i32
  }
  func.func @transform_11(%arg0: i32, %arg1: i32) -> (i32, i32, i32) {
    %c0_i32 = arith.constant 0 : i32
    %c0_i32_0 = arith.constant 0 : i32
    %c0_i32_1 = arith.constant 0 : i32
    return %arg0, %c0_i32, %c0_i32_0 : i32, i32, i32
  }
}

</mosaic_0001>

<bundles_post_ra>
// kernel: tpu_custom_call.1
= control target key start
LH: loop header
LB: loop body
LE: loop exit
PB: predicated region body
PF: predicated region fallthrough
CT: control target
= control target key end

     0   :  { %s3566_s0 = inlined_call_operand.hbm [shape: f32[2,8,32], index: 0, kind: input, shape index: {}]   ;;  %s3567_s1 = inlined_call_operand.hbm [shape: bf16[2,32,96], index: 1, kind: input, shape index: {}]   ;;  %s3568_s2 = inlined_call_operand.hbm [shape: f32[2,1,96], index: 2, kind: input, shape index: {}]   ;;  %s3569_s3 = inlined_call_operand.hbm [shape: bf16[2,32,32], index: 3, kind: input, shape index: {}]   ;;  %s3570_s4 = inlined_call_operand.hbm [shape: f32[2,1,32], index: 4, kind: input, shape index: {}]   ;;  %s3571_s5 = inlined_call_operand.hbm [shape: f32[2,1,32], index: 5, kind: input, shape index: {}]   ;;  %s3572_s6 = inlined_call_operand.hbm [shape: f32[2,1,32], index: 6, kind: input, shape index: {}]   ;;  %s3573_s7 = inlined_call_operand.hbm [shape: bf16[2,32,64], index: 7, kind: input, shape index: {}]   ;;  %s3574_s8 = inlined_call_operand.hbm [shape: f32[2,1,64], index: 8, kind: input, shape index: {}]   ;;  %s3575_s9 = inlined_call_operand.hbm [shape: bf16[2,64,32], index: 9, kind: input, shape index: {}]   ;;  %s3576_s10 = inlined_call_operand.hbm [shape: f32[2,1,32], index: 10, kind: input, shape index: {}]   ;;  %s3577_s11 = inlined_call_operand.hbm [shape: f32[2,8,32], index: 11, kind: output, shape index: {}]  }
   0x1   :  { %3609 = sst [smem:[#allocation36_spill]] %s3566_s0 }
   0x2   :  { %3610 = sst [smem:[#allocation37_spill]] %s3567_s1 }
   0x3   :  { %3611 = sst [smem:[#allocation38_spill]] %s3568_s2 }
   0x4   :  { %3612 = sst [smem:[#allocation39_spill]] %s3569_s3 }
   0x5   :  { %3613 = sst [smem:[#allocation40_spill]] %s3570_s4 }
   0x6   :  { %3614 = sst [smem:[#allocation41_spill]] %s3571_s5 }
   0x7   :  { %3615 = sst [smem:[#allocation42_spill]] %s3572_s6 }
   0x8   :  { %3616 = sst [smem:[#allocation43_spill]] %s3573_s7 }
   0x9   :  { %3617 = sst [smem:[#allocation44_spill]] %s3574_s8 }
   0xa   :  { %3618 = sst [smem:[#allocation45_spill]] %s3575_s9 }
   0xb   :  { %3619 = sst [smem:[#allocation46_spill]] %s3576_s10 }
   0xc   :  { %3620 = sst [smem:[#allocation47_spill]] %s3577_s11 }
   0xd   :  { %16 = vsyncpa [#allocation3], 0 }
   0xe   :  { %18 = vsyncpa [#allocation3 + $0x1], 0 }
   0xf   :  { %19 = vsyncpa [#allocation6], 0 }
  0x10   :  { %21 = vsyncpa [#allocation6 + $0x1], 0 }
  0x11   :  { %22 = vsyncpa [#allocation9], 0 }
  0x12   :  { %24 = vsyncpa [#allocation9 + $0x1], 0 }
  0x13   :  { %25 = vsyncpa [#allocation12], 0 }
  0x14   :  { %27 = vsyncpa [#allocation12 + $0x1], 0 }
  0x15   :  { %28 = vsyncpa [#allocation15], 0 }
  0x16   :  { %30 = vsyncpa [#allocation15 + $0x1], 0 }
  0x17   :  { %31 = vsyncpa [#allocation18], 0 }
  0x18   :  { %33 = vsyncpa [#allocation18 + $0x1], 0 }
  0x19   :  { %34 = vsyncpa [#allocation4], 0 }
  0x1a   :  { %36 = vsyncpa [#allocation4 + $0x1], 0  ;;  %s2806_s17 = smov 0   ;;  %s2808_s18 = smov 0  }
  0x1b   :  { %s2810_s19 = smov 0   ;;  %s2812_s20 = smov 0  }
  0x1c   :  { %s2814_s21 = smov 0   ;;  %s2816_s22 = smov 0  }
  0x1d   :  { %s2818_s23 = smov 0   ;;  %s2820_s24 = smov 0  }
  0x1e   :  { %s2822_s25 = smov 0   ;;  %s2824_s26 = smov 0  }
  0x1f   :  { %s2826_s27 = smov 0  }
  0x20 LB: > { %3621 = sst [smem:[#allocation28_spill]] %s2684_s18  ;;  %p3584_p0 = scmp.eq.s32.totalorder %s2720_s27, 0  ;;  %s2720_s27 = sphi %s2826_s27, %s42_s27   ;;  %s2716_s26 = sphi %s2824_s26, %s3684_s26   ;;  %s2712_s25 = sphi %s2822_s25, %s3683_s25   ;;  %s2708_s24 = sphi %s2820_s24, %s3682_s24   ;;  %s2704_s23 = sphi %s2818_s23, %s3681_s23   ;;  %s2700_s22 = sphi %s2816_s22, %s3689_s22   ;;  %s2696_s21 = sphi %s2814_s21, %s3688_s21   ;;  %s2692_s20 = sphi %s2812_s20, %s3687_s20   ;;  %s2688_s19 = sphi %s2810_s19, %s3686_s19   ;;  %s2684_s18 = sphi %s2808_s18, %s3685_s18   ;;  %s2680_s17 = sphi %s2806_s17, %s3680_s17  }
  0x21   : > { %3622 = sst [smem:[#allocation29_spill]] %s2704_s23  ;;  %p94_p1 = scmp.ne.s32.totalorder %s2688_s19, %s2684_s18 }
  0x22   : > { %3623 = sst [smem:[#allocation30_spill]] %s2708_s24  ;;  %p3583_p2 = scmp.lt.s32.totalorder %s2720_s27, 4 }
  0x23   : > { %3624 = sst [smem:[#allocation31_spill]] %s2712_s25  ;;  %p96_p3 = por %p94_p1, %p3584_p0 }
  0x24   : > { %3625 = sst [smem:[#allocation32_spill]] %s2716_s26  ;;  %s2868_s28 = sand.u32 1, %s2720_s27  }
  0x25   : > { %s2871_s29 = sand.u32 1, %s2688_s19   ;;  %s2877_s12 = sshll.u32 %s2712_s25, 8 }
  0x26   : > { %s2874_s30 = sshll.u32 %s2871_s29, 4  ;;  %s3626_s1 = sld [smem:[#allocation37_spill]] }
  0x27   : > { %s406_s16 = scalar_lea.vmem [#allocation5], %s2874_s30  ;;  %p2888_p4 = pnand %p3583_p2, %p96_p3 }
  0x28   : > { %s413_s11 = sshll.u32 %s406_s16, 4  ;;  %s2892_s11 = int_to_ptr.vmem [resolvable:$true] %s413_s11 }
  0x29   : > { %s3627_s24 = scalar_select %p2888_p4, 1, 0 }
  0x2a   : > { %p2899_p6 = pneg %p2888_p4 }
  0x2c   : > { %s2883_s15 = scalar_lea.hbm %s3626_s1, %s2877_s12  ;;  %s2253_s8 = scalar_lea.hbm %s3626_s1, 512 }
  0x2d   : > { %s2248_s10 = scalar_lea.hbm %s2883_s15, 256  ;;  %p2254_p9 = scmp.lt.u32.totalorder %s2883_s15, %s3626_s1 }
  0x2e   : > { %p2249_p5 = scmp.ne.s32.totalorder %s2883_s15, %s2248_s10  ;;  %p2255_p10 = scmp.lt.u32.totalorder %s2253_s8, %s2248_s10 }
  0x2f   : > { %p2257_p12 = scmp.lt.u32.totalorder %s2248_s10, %s2883_s15 }
  0x30   : > { %p2251_p7 = pnand %p2899_p6, %p2249_p5  ;;  %p2256_p11 = por %p2255_p10, %p2254_p9 }
  0x32   : > { %p2252_p8 = pneg %p2251_p7  ;;  %p2258_p13 = por %p2257_p12, %p2256_p11 }
  0x34   : > { %p2259_p1 = pnand %p2258_p13, %p2252_p8 }
  0x36   : > { %2262 = shalt.err (!%p2259_p1)
}
  0x37   : > { %s2263_s23 = scalar_lea.vmem %s2892_s11, 256  ;;  %s2722_s14 = smov [#allocation5]  }
  0x38   : > { %p2264_p3 = scmp.ne.s32.totalorder %s2892_s11, %s2263_s23  ;;  %s2268_s16 = sshll.u32 %s2722_s14, 4  ;;  %s2269_s16 = int_to_ptr.vmem [resolvable:$false] %s2268_s16 }
  0x39   : > { %s2270_s4 = scalar_lea.vmem %s2269_s16, 512  ;;  %p2271_p2 = scmp.lt.s32.totalorder %s2892_s11, %s2269_s16 }
  0x3a   : > { %p2266_p5 = pnand %p2264_p3, %p2899_p6  ;;  %p2272_p0 = scmp.lt.s32.totalorder %s2270_s4, %s2263_s23 }
  0x3c   : > { %p2267_p7 = pneg %p2266_p5  ;;  %p2273_p9 = por %p2272_p0, %p2271_p2 }
  0x3e   : > { %p2274_p10 = pnand %p2273_p9, %p2267_p7 }
  0x40   : > { %2277 = shalt.err (!%p2274_p10)
}
  0x41   : > { %s3587_s6 = smov 64   ;;  %s3589_s8 = smov 4  }
  0x42   : > { %s3629_s10 = scalar_lea.sflag [#allocation6], %s2868_s28  ;;  %p1896_p0 = scmp.ge.s32.totalorder %s2720_s27, 1 }
  0x43   : > { %2084 = dma.hbm_to_vmem [thread:$0]  (!%p2888_p4), %s2883_s15, 256, %s2892_s11, %s3629_s10, %s3587_s6, %s3587_s6, %s3589_s8  }
  0x44   : > { %p586_p2 = scmp.lt.s32.totalorder %s2720_s27, 5  ;;  %s3632_s3 = sld [smem:[#allocation39_spill]] }
  0x45   : > { %s444_s1 = scalar_lea.vmem [#allocation8], %s2874_s30  ;;  %s2941_s0 = sshll.u32 %s2712_s25, 4 }
  0x46   : > { %p2929_p8 = pnand %p1896_p0, %p586_p2  ;;  %s451_s2 = sshll.u32 %s444_s1, 4  ;;  %s2943_s2 = int_to_ptr.vmem [resolvable:$true] %s451_s2 }
  0x47   : > { %s3593_s11 = scalar_lea.sflag [#allocation9], %s2868_s28 }
  0x48   : > { %s3630_s23 = scalar_select %p2929_p8, 1, 0 }
  0x4a   : > { %3631 = sst [smem:[#allocation33_spill]] %s3630_s23  ;;  %s2937_s4 = scalar_lea.hbm %s3632_s3, %s2877_s12 }
  0x4b   : > { %s2278_s15 = scalar_lea.hbm %s2937_s4, 256  ;;  %s2283_s16 = scalar_lea.hbm %s3632_s3, 512 }
  0x4c   : > { %p2279_p11 = scmp.ne.s32.totalorder %s2937_s4, %s2278_s15  ;;  %p2284_p1 = scmp.lt.u32.totalorder %s2937_s4, %s3632_s3 }
  0x4d   : > { %p2285_p3 = scmp.lt.u32.totalorder %s2283_s16, %s2278_s15  ;;  %p2287_p7 = scmp.lt.u32.totalorder %s2278_s15, %s2937_s4 }
  0x4e   : > { %p2281_p12 = pnand %p2279_p11, %p2899_p6 }
  0x4f   : > { %p2286_p5 = por %p2285_p3, %p2284_p1 }
  0x50   : > { %p2282_p13 = pneg %p2281_p12 }
  0x51   : > { %p2288_p9 = por %p2287_p7, %p2286_p5 }
  0x53   : > { %p2289_p10 = pnand %p2288_p9, %p2282_p13 }
  0x55   : > { %2292 = shalt.err (!%p2289_p10)
}
  0x56   : > { %s2293_s1 = scalar_lea.vmem %s2943_s2, 256  ;;  %s2725_s10 = smov [#allocation8]  }
  0x57   : > { %p2294_p0 = scmp.ne.s32.totalorder %s2943_s2, %s2293_s1  ;;  %s2298_s14 = sshll.u32 %s2725_s10, 4  ;;  %s2299_s14 = int_to_ptr.vmem [resolvable:$false] %s2298_s14 }
  0x58   : > { %s2300_s6 = scalar_lea.vmem %s2299_s14, 512  ;;  %p2301_p12 = scmp.lt.s32.totalorder %s2943_s2, %s2299_s14 }
  0x59   : > { %p2296_p2 = pnand %p2294_p0, %p2899_p6  ;;  %p2302_p8 = scmp.lt.s32.totalorder %s2300_s6, %s2293_s1 }
  0x5b   : > { %p2297_p11 = pneg %p2296_p2  ;;  %p2303_p1 = por %p2302_p8, %p2301_p12 }
  0x5d   : > { %p2304_p3 = pnand %p2303_p1, %p2297_p11 }
  0x5f   : > { %2307 = shalt.err (!%p2304_p3)
}
  0x60   : > { %s3633_s8 = smov 4   ;;  %s3634_s15 = smov 64  }
  0x61   : > { %2090 = dma.hbm_to_vmem [thread:$0]  (!%p2888_p4), %s2937_s4, 256, %s2943_s2, %s3593_s11, %s3634_s15, %s3634_s15, %s3633_s8  }
  0x62   : > { %s3635_s5 = sld [smem:[#allocation41_spill]]  ;;  %s481_s14 = scalar_lea.vmem [#allocation11], %s2871_s29 }
  0x63   : > { %s488_s6 = sshll.u32 %s481_s14, 4  ;;  %s489_s6 = int_to_ptr.vmem [resolvable:$true] %s488_s6 }
  0x68   : > { %s2976_s1 = scalar_lea.hbm %s3635_s5, %s2941_s0  ;;  %s2313_s4 = scalar_lea.hbm %s3635_s5, 32 }
  0x69   : > { %s2308_s23 = scalar_lea.hbm %s2976_s1, 16  ;;  %p2314_p7 = scmp.lt.u32.totalorder %s2976_s1, %s3635_s5 }
  0x6a   : > { %p2309_p8 = scmp.ne.s32.totalorder %s2976_s1, %s2308_s23  ;;  %p2315_p9 = scmp.lt.u32.totalorder %s2313_s4, %s2308_s23 }
  0x6b   : > { %p2317_p0 = scmp.lt.u32.totalorder %s2308_s23, %s2976_s1 }
  0x6c   : > { %p2311_p13 = pnand %p2309_p8, %p2899_p6  ;;  %p2316_p10 = por %p2315_p9, %p2314_p7 }
  0x6e   : > { %p2312_p5 = pneg %p2311_p13  ;;  %p2318_p2 = por %p2317_p0, %p2316_p10 }
  0x70   : > { %p2319_p11 = pnand %p2318_p2, %p2312_p5 }
  0x72   : > { %2322 = shalt.err (!%p2319_p11)
}
  0x73   : > { %s2323_s14 = scalar_lea.vmem %s489_s6, 16  ;;  %s2726_s11 = smov [#allocation11]  }
  0x74   : > { %p2324_p12 = scmp.ne.s32.totalorder %s489_s6, %s2323_s14  ;;  %s2328_s3 = sshll.u32 %s2726_s11, 4  ;;  %s2329_s3 = int_to_ptr.vmem [resolvable:$false] %s2328_s3 }
  0x75   : > { %s2330_s18 = scalar_lea.vmem %s2329_s3, 32  ;;  %p2331_p8 = scmp.lt.s32.totalorder %s489_s6, %s2329_s3 }
  0x76   : > { %p2326_p1 = pnand %p2324_p12, %p2899_p6  ;;  %p2332_p13 = scmp.lt.s32.totalorder %s2330_s18, %s2323_s14 }
  0x78   : > { %p2327_p3 = pneg %p2326_p1  ;;  %p2333_p4 = por %p2332_p13, %p2331_p8 }
  0x7a   : > { %p2334_p7 = pnand %p2333_p4, %p2327_p3 }
  0x7c   : > { %2337 = shalt.err (!%p2334_p7)
}
  0x7d   : > { %p3636_p9 = scmp.ne.s32.totalorder %s3627_s24, 0  ;;  %s3637_s23 = scalar_lea.sflag [#allocation12], %s2868_s28 }
  0x7e   : > { %s3638_s7 = sld [smem:[#allocation43_spill]]  ;;  %s516_s3 = scalar_lea.vmem [#allocation14], %s2874_s30 }
  0x7f   : > { %2096 = dma.hbm_to_vmem [thread:$0]  (!%p3636_p9), %s2976_s1, 16, %s489_s6, %s3637_s23  }
  0x80   : > { %s523_s16 = sshll.u32 %s516_s3, 4  ;;  %s3597_s10 = scalar_lea.sflag [#allocation15], %s2868_s28  ;;  %s3006_s16 = int_to_ptr.vmem [resolvable:$true] %s523_s16 }
  0x84   : > { %s3003_s11 = scalar_lea.hbm %s3638_s7, %s2877_s12  ;;  %s2343_s18 = scalar_lea.hbm %s3638_s7, 512 }
  0x85   : > { %s2338_s14 = scalar_lea.hbm %s3003_s11, 256  ;;  %p2344_p0 = scmp.lt.u32.totalorder %s3003_s11, %s3638_s7 }
  0x86   : > { %p2339_p4 = scmp.ne.s32.totalorder %s3003_s11, %s2338_s14  ;;  %p2345_p2 = scmp.lt.u32.totalorder %s2343_s18, %s2338_s14 }
  0x87   : > { %p2347_p12 = scmp.lt.u32.totalorder %s2338_s14, %s3003_s11 }
  0x88   : > { %p2341_p5 = pnand %p2339_p4, %p2899_p6  ;;  %p2346_p11 = por %p2345_p2, %p2344_p0 }
  0x8a   : > { %p2342_p10 = pneg %p2341_p5  ;;  %p2348_p1 = por %p2347_p12, %p2346_p11 }
  0x8c   : > { %p2349_p3 = pnand %p2348_p1, %p2342_p10 }
  0x8e   : > { %2352 = shalt.err (!%p2349_p3)
}
  0x8f   : > { %s2353_s30 = scalar_lea.vmem %s3006_s16, 256  ;;  %s2727_s2 = smov [#allocation14]  }
  0x90   : > { %p2354_p8 = scmp.ne.s32.totalorder %s3006_s16, %s2353_s30  ;;  %s2358_s4 = sshll.u32 %s2727_s2, 4  ;;  %s2359_s4 = int_to_ptr.vmem [resolvable:$false] %s2358_s4 }
  0x91   : > { %s2360_s3 = scalar_lea.vmem %s2359_s4, 512  ;;  %p2361_p4 = scmp.lt.s32.totalorder %s3006_s16, %s2359_s4 }
  0x92   : > { %p2356_p13 = pnand %p2354_p8, %p2899_p6  ;;  %p2362_p5 = scmp.lt.s32.totalorder %s2360_s3, %s2353_s30 }
  0x94   : > { %p2357_p7 = pneg %p2356_p13  ;;  %p2363_p0 = por %p2362_p5, %p2361_p4 }
  0x96   : > { %p2364_p2 = pnand %p2363_p0, %p2357_p7 }
  0x98   : > { %2367 = shalt.err (!%p2364_p2)
}
  0x99   : > { %2102 = dma.hbm_to_vmem [thread:$0]  (!%p3636_p9), %s3003_s11, 256, %s3006_s16, %s3597_s10, %s3634_s15, %s3634_s15, %s3633_s8  }
  0x9a   : > { %s1892_s14 = sshll.u32 %s2871_s29, 5  ;;  %s1939_s1 = sshll.u32 %s2712_s25, 9 }
  0x9b   : > { %s3639_s9 = sld [smem:[#allocation45_spill]]  ;;  %s554_s23 = scalar_lea.vmem [#allocation17], %s1892_s14 }
  0x9c   : > { %s561_s30 = sshll.u32 %s554_s23, 4  ;;  %s3596_s2 = scalar_lea.sflag [#allocation18], %s2868_s28  ;;  %s3042_s30 = int_to_ptr.vmem [resolvable:$true] %s561_s30 }
  0xa1   : > { %s3040_s12 = scalar_lea.hbm %s3639_s9, %s1939_s1  ;;  %s2373_s3 = scalar_lea.hbm %s3639_s9, 1024 }
  0xa2   : > { %s2368_s4 = scalar_lea.hbm %s3040_s12, 512  ;;  %p2374_p1 = scmp.lt.u32.totalorder %s3040_s12, %s3639_s9 }
  0xa3   : > { %p2369_p10 = scmp.ne.s32.totalorder %s3040_s12, %s2368_s4  ;;  %p2375_p3 = scmp.lt.u32.totalorder %s2373_s3, %s2368_s4 }
  0xa4   : > { %p2377_p13 = scmp.lt.u32.totalorder %s2368_s4, %s3040_s12 }
  0xa5   : > { %p2371_p11 = pnand %p2369_p10, %p2899_p6  ;;  %p2376_p8 = por %p2375_p3, %p2374_p1 }
  0xa7   : > { %p2372_p12 = pneg %p2371_p11  ;;  %p2378_p7 = por %p2377_p13, %p2376_p8 }
  0xa9   : > { %p2379_p4 = pnand %p2378_p7, %p2372_p12 }
  0xab   : > { %2382 = shalt.err (!%p2379_p4)
}
  0xac   : > { %s2383_s14 = scalar_lea.vmem %s3042_s30, 512  ;;  %s2728_s18 = smov [#allocation17]  }
  0xad   : > { %p2384_p5 = scmp.ne.s32.totalorder %s3042_s30, %s2383_s14  ;;  %s2388_s23 = sshll.u32 %s2728_s18, 4  ;;  %s2389_s23 = int_to_ptr.vmem [resolvable:$false] %s2388_s23 }
  0xae   : > { %s2390_s11 = scalar_lea.vmem %s2389_s23, 1024  ;;  %p2391_p10 = scmp.lt.s32.totalorder %s3042_s30, %s2389_s23 }
  0xaf   : > { %p2386_p0 = pnand %p2384_p5, %p2899_p6  ;;  %p2392_p11 = scmp.lt.s32.totalorder %s2390_s11, %s2383_s14 }
  0xb1   : > { %p2387_p2 = pneg %p2386_p0  ;;  %p2393_p1 = por %p2392_p11, %p2391_p10 }
  0xb3   : > { %p2394_p3 = pnand %p2393_p1, %p2387_p2 }
  0xb5   : > { %2397 = shalt.err (!%p2394_p3)
}
  0xb6   : > { %2108 = dma.hbm_to_vmem [thread:$0]  (!%p3636_p9), %s3040_s12, 512, %s3042_s30, %s3596_s2, %s3634_s15, %s3634_s15, %s3633_s8  }
  0xb7   : > { %s3072_s4 = sadd.s32 4294967295, %s2720_s27   ;;  %s1873_s16 = sadd.s32 4294967294, %s2720_s27  }
  0xb8   : > { %s51_s3 = sadd.s32 1, %s2712_s25  ;;  %s3640_s1 = sld [smem:[#allocation28_spill]] }
  0xb9   : > { %s54_s6 = sadd.s32 1, %s2716_s26  ;;  %p52_p12 = scmp.ge.s32.totalorder %s51_s3, 2 }
  0xba   : > { %s61_s14 = sadd.s32 1, %s2700_s22  ;;  %p68_p8 = scmp.ne.s32.totalorder %s2700_s22, %s2696_s21 }
  0xbb   : > { %p74_p13 = scmp.ne.s32.totalorder %s2696_s21, %s2692_s20  ;;  %s3691_s3 = smov (%p52_p12, %s51_s3), 0 }
  0xbc   : > { %3641 = sst [smem:[#allocation34_spill]] %s3691_s3  ;;  %s3693_s6 = smov (!%p52_p12, %s54_s6), %s2716_s26 }
  0xbd   : > { %p3642_p7 = scmp.eq.s32.totalorder %s2720_s27, 0  ;;  %p75_p5 = scmp.eq.s32.totalorder %s3072_s4, 0 }
  0xbe   : > { %p56_p0 = scmp.ge.s32.totalorder %s3693_s6, 2  ;;  %s84_s15 = ssub.s32 %s2712_s25, %s3691_s3 }
  0xbf   : > { %p3090_p4 = por %p3642_p7, %p68_p8  ;;  %p3100_p2 = por %p75_p5, %p74_p13 }
  0xc0   : > { %p85_p10 = scmp.eq.s32.totalorder %s84_s15, 0  ;;  %s3695_s6 = smov (%p56_p0, %s3693_s6), 0 }
  0xc1   : > { %s3644_s12 = scalar_select %p3100_p2, 1, 0 }
  0xc2   : > { %3645 = sst [smem:[#allocation35_spill]] %s3695_s6  ;;  %s87_s30 = sadd.s32 1, %s2688_s19 }
  0xc3   : > { %p100_p11 = scmp.ne.s32.totalorder %s3640_s1, %s2680_s17  ;;  %s58_s18 = ssub.s32 %s2716_s26, %s3695_s6 }
  0xc4   : > { %p358_p1 = scmp.eq.s32.totalorder %s3072_s4, 3  ;;  %p59_p3 = scmp.eq.s32.totalorder %s58_s18, 0 }
  0xc5   : > { %p3112_p12 = por %p100_p11, %p75_p5  ;;  %p364_p0 = scmp.eq.s32.totalorder %s1873_s16, 3 }
  0xc6   : > { %s3117_s11 = scalar_select %p85_p10, %s2688_s19, %s87_s30  }
  0xc7   : > { %s3646_s23 = scalar_select %p3112_p12, 1, 0 }
  0xc8   : > { %s3120_s2 = scalar_select %p59_p3, %s2700_s22, %s61_s14  }
  0xc9   : > { %p3125_p7 = por %p358_p1, %p68_p8  ;;  %s384_s10 = sand.u32 1, %s2700_s22  }
  0xca   : > { %s1877_s5 = sshll.u32 %s2716_s26, 7  ;;  %p3134_p2 = por %p364_p0, %p74_p13 }
  0xcb   : > { %s3647_s15 = scalar_select %p3125_p7, 1, 0 }
  0xcc   : > { %s3648_s17 = scalar_select %p3134_p2, 1, 0 }
  0xcd   : > { %s1876_s1 = sshll.u32 %s384_s10, 3  ;;  %s3649_s30 = sld [smem:[#allocation36_spill]] }
  0xce   : > { %p3650_p5 = scmp.lt.s32.totalorder %s2720_s27, 4  ;;  %s388_s14 = scalar_lea.vmem [#allocation2], %s1876_s1 }
  0xcf   : > { %s395_s6 = sshll.u32 %s388_s14, 4  ;;  %s385_s3 = scalar_lea.sflag [#allocation3], %s384_s10  ;;  %s3151_s6 = int_to_ptr.vmem [resolvable:$true] %s395_s6 }
  0xd0   : > { %p3147_p8 = pnand %p3650_p5, %p3090_p4 }
  0xd2   : > { %p2400_p10 = pneg %p3147_p8 }
  0xd3   : > { %s3141_s9 = scalar_lea.hbm %s3649_s30, %s1877_s5  ;;  %s2403_s18 = scalar_lea.hbm %s3649_s30, 256 }
  0xd4   : > { %s2398_s7 = scalar_lea.hbm %s3141_s9, 128  ;;  %p2404_p4 = scmp.lt.u32.totalorder %s3141_s9, %s3649_s30 }
  0xd5   : > { %p2399_p13 = scmp.ne.s32.totalorder %s3141_s9, %s2398_s7  ;;  %p2405_p3 = scmp.lt.u32.totalorder %s2403_s18, %s2398_s7 }
  0xd6   : > { %p2407_p5 = scmp.lt.u32.totalorder %s2398_s7, %s3141_s9 }
  0xd7   : > { %p2401_p11 = pnand %p2400_p10, %p2399_p13  ;;  %p2406_p0 = por %p2405_p3, %p2404_p4 }
  0xd9   : > { %p2402_p1 = pneg %p2401_p11  ;;  %p2408_p2 = por %p2407_p5, %p2406_p0 }
  0xdb   : > { %p2409_p7 = pnand %p2408_p2, %p2402_p1 }
  0xdd   : > { %2412 = shalt.err (!%p2409_p7)
}
  0xde   : > { %s2413_s10 = scalar_lea.vmem %s3151_s6, 128  ;;  %s2729_s1 = smov [#allocation2]  }
  0xdf   : > { %p2414_p13 = scmp.ne.s32.totalorder %s3151_s6, %s2413_s10  ;;  %s2418_s14 = sshll.u32 %s2729_s1, 4  ;;  %s2419_s14 = int_to_ptr.vmem [resolvable:$false] %s2418_s14 }
  0xe0   : > { %s2420_s25 = scalar_lea.vmem %s2419_s14, 256  ;;  %p2421_p9 = scmp.lt.s32.totalorder %s3151_s6, %s2419_s14 }
  0xe1   : > { %p2416_p11 = pnand %p2414_p13, %p2400_p10  ;;  %p2422_p4 = scmp.lt.s32.totalorder %s2420_s25, %s2413_s10 }
  0xe3   : > { %p2417_p12 = pneg %p2416_p11  ;;  %p2423_p3 = por %p2422_p4, %p2421_p9 }
  0xe5   : > { %p2424_p0 = pnand %p2423_p3, %p2417_p12 }
  0xe7   : > { %2427 = shalt.err (!%p2424_p0)
}
  0xe8   : > { %2081 = dma.hbm_to_vmem [thread:$0]  (!%p3147_p8), %s3141_s9, 128, %s3151_s6, %s385_s3  }
  0xe9   : > { %s3652_s5 = sld [smem:[#allocation38_spill]]  ;;  %s426_s18 = scalar_lea.vmem [#allocation7], %s2871_s29 }
  0xea   : > { %s433_s10 = sshll.u32 %s426_s18, 4  ;;  %s434_s10 = int_to_ptr.vmem [resolvable:$true] %s433_s10 }
  0xef   : > { %s3182_s8 = scalar_lea.hbm %s3652_s5, %s2941_s0  ;;  %s2433_s9 = scalar_lea.hbm %s3652_s5, 32 }
  0xf0   : > { %s2428_s1 = scalar_lea.hbm %s3182_s8, 16  ;;  %p2434_p7 = scmp.lt.u32.totalorder %s3182_s8, %s3652_s5 }
  0xf1   : > { %p2429_p9 = scmp.ne.s32.totalorder %s3182_s8, %s2428_s1  ;;  %p2435_p8 = scmp.lt.u32.totalorder %s2433_s9, %s2428_s1 }
  0xf2   : > { %p2437_p1 = scmp.lt.u32.totalorder %s2428_s1, %s3182_s8 }
  0xf3   : > { %p2431_p2 = pnand %p2429_p9, %p2899_p6  ;;  %p2436_p10 = por %p2435_p8, %p2434_p7 }
  0xf5   : > { %p2432_p12 = pneg %p2431_p2  ;;  %p2438_p5 = por %p2437_p1, %p2436_p10 }
  0xf7   : > { %p2439_p13 = pnand %p2438_p5, %p2432_p12 }
  0xf9   : > { %2442 = shalt.err (!%p2439_p13)
}
  0xfa   : > { %s2443_s25 = scalar_lea.vmem %s434_s10, 16  ;;  %s2730_s26 = smov [#allocation7]  }
  0xfb   : > { %p2444_p11 = scmp.ne.s32.totalorder %s434_s10, %s2443_s25  ;;  %s2448_s7 = sshll.u32 %s2730_s26, 4  ;;  %s2449_s7 = int_to_ptr.vmem [resolvable:$false] %s2448_s7 }
  0xfc   : > { %s2450_s18 = scalar_lea.vmem %s2449_s7, 32  ;;  %p2451_p0 = scmp.lt.s32.totalorder %s434_s10, %s2449_s7 }
  0xfd   : > { %p2446_p4 = pnand %p2444_p11, %p2899_p6  ;;  %p2452_p9 = scmp.lt.s32.totalorder %s2450_s18, %s2443_s25 }
  0xff   : > { %p2447_p3 = pneg %p2446_p4  ;;  %p2453_p2 = por %p2452_p9, %p2451_p0 }
 0x101   : > { %p2454_p7 = pnand %p2453_p2, %p2447_p3 }
 0x103   : > { %2457 = shalt.err (!%p2454_p7)
}
 0x104   : > { %p3653_p8 = scmp.ne.s32.totalorder %s3627_s24, 0  ;;  %s3654_s1 = scalar_lea.sflag [#allocation6], %s2868_s28 }
 0x105   : > { %s3655_s9 = sld [smem:[#allocation40_spill]]  ;;  %s464_s6 = scalar_lea.vmem [#allocation10], %s2871_s29 }
 0x106   : > { %2087 = dma.hbm_to_vmem [thread:$0]  (!%p3653_p8), %s3182_s8, 16, %s434_s10, %s3654_s1  }
 0x107   : > { %s471_s25 = sshll.u32 %s464_s6, 4  ;;  %s472_s25 = int_to_ptr.vmem [resolvable:$true] %s471_s25 }
 0x10b   : > { %s3208_s3 = scalar_lea.hbm %s3655_s9, %s2941_s0  ;;  %s2463_s8 = scalar_lea.hbm %s3655_s9, 32 }
 0x10c   : > { %s2458_s26 = scalar_lea.hbm %s3208_s3, 16  ;;  %p2464_p5 = scmp.lt.u32.totalorder %s3208_s3, %s3655_s9 }
 0x10d   : > { %p2459_p12 = scmp.ne.s32.totalorder %s3208_s3, %s2458_s26  ;;  %p2465_p13 = scmp.lt.u32.totalorder %s2463_s8, %s2458_s26 }
 0x10e   : > { %p2467_p4 = scmp.lt.u32.totalorder %s2458_s26, %s3208_s3 }
 0x10f   : > { %p2461_p10 = pnand %p2459_p12, %p2899_p6  ;;  %p2466_p11 = por %p2465_p13, %p2464_p5 }
 0x111   : > { %p2462_p1 = pneg %p2461_p10  ;;  %p2468_p3 = por %p2467_p4, %p2466_p11 }
 0x113   : > { %p2469_p0 = pnand %p2468_p3, %p2462_p1 }
 0x115   : > { %2472 = shalt.err (!%p2469_p0)
}
 0x116   : > { %s2473_s16 = scalar_lea.vmem %s472_s25, 16  ;;  %s2731_s14 = smov [#allocation10]  }
 0x117   : > { %p2474_p9 = scmp.ne.s32.totalorder %s472_s25, %s2473_s16  ;;  %s2478_s6 = sshll.u32 %s2731_s14, 4  ;;  %s2479_s6 = int_to_ptr.vmem [resolvable:$false] %s2478_s6 }
 0x118   : > { %s2480_s7 = scalar_lea.vmem %s2479_s6, 32  ;;  %p2481_p12 = scmp.lt.s32.totalorder %s472_s25, %s2479_s6 }
 0x119   : > { %p2476_p2 = pnand %p2474_p9, %p2899_p6  ;;  %p2482_p10 = scmp.lt.s32.totalorder %s2480_s7, %s2473_s16 }
 0x11b   : > { %p2477_p7 = pneg %p2476_p2  ;;  %p2483_p8 = por %p2482_p10, %p2481_p12 }
 0x11d   : > { %p2484_p5 = pnand %p2483_p8, %p2477_p7 }
 0x11f   : > { %2487 = shalt.err (!%p2484_p5)
}
 0x120   : > { %p3656_p13 = scmp.ne.s32.totalorder %s3627_s24, 0  ;;  %s3657_s26 = scalar_lea.sflag [#allocation9], %s2868_s28 }
 0x121   : > { %s3658_s10 = sld [smem:[#allocation42_spill]]  ;;  %s498_s16 = scalar_lea.vmem [#allocation13], %s2871_s29 }
 0x122   : > { %2093 = dma.hbm_to_vmem [thread:$0]  (!%p3656_p13), %s3208_s3, 16, %s472_s25, %s3657_s26  }
 0x123   : > { %s505_s14 = sshll.u32 %s498_s16, 4  ;;  %s506_s14 = int_to_ptr.vmem [resolvable:$true] %s505_s14 }
 0x127   : > { %s3234_s1 = scalar_lea.hbm %s3658_s10, %s2941_s0  ;;  %s2493_s3 = scalar_lea.hbm %s3658_s10, 32 }
 0x128   : > { %s2488_s6 = scalar_lea.hbm %s3234_s1, 16  ;;  %p2494_p4 = scmp.lt.u32.totalorder %s3234_s1, %s3658_s10 }
 0x129   : > { %p2489_p8 = scmp.ne.s32.totalorder %s3234_s1, %s2488_s6  ;;  %p2495_p3 = scmp.lt.u32.totalorder %s2493_s3, %s2488_s6 }
 0x12a   : > { %p2497_p9 = scmp.lt.u32.totalorder %s2488_s6, %s3234_s1 }
 0x12b   : > { %p2491_p1 = pnand %p2489_p8, %p2899_p6  ;;  %p2496_p0 = por %p2495_p3, %p2494_p4 }
 0x12d   : > { %p2492_p11 = pneg %p2491_p1  ;;  %p2498_p2 = por %p2497_p9, %p2496_p0 }
 0x12f   : > { %p2499_p7 = pnand %p2498_p2, %p2492_p11 }
 0x131   : > { %2502 = shalt.err (!%p2499_p7)
}
 0x132   : > { %s2503_s18 = scalar_lea.vmem %s506_s14, 16  ;;  %s2732_s8 = smov [#allocation13]  }
 0x133   : > { %p2504_p12 = scmp.ne.s32.totalorder %s506_s14, %s2503_s18  ;;  %s2508_s16 = sshll.u32 %s2732_s8, 4  ;;  %s2509_s16 = int_to_ptr.vmem [resolvable:$false] %s2508_s16 }
 0x134   : > { %s2510_s5 = scalar_lea.vmem %s2509_s16, 32  ;;  %p2511_p8 = scmp.lt.s32.totalorder %s506_s14, %s2509_s16 }
 0x135   : > { %p2506_p10 = pnand %p2504_p12, %p2899_p6  ;;  %p2512_p1 = scmp.lt.s32.totalorder %s2510_s5, %s2503_s18 }
 0x137   : > { %p2507_p5 = pneg %p2506_p10  ;;  %p2513_p13 = por %p2512_p1, %p2511_p8 }
 0x139   : > { %p2514_p3 = pnand %p2513_p13, %p2507_p5 }
 0x13b   : > { %2517 = shalt.err (!%p2514_p3)
}
 0x13c   : > { %p3659_p4 = scmp.ne.s32.totalorder %s3627_s24, 0  ;;  %s3660_s6 = scalar_lea.sflag [#allocation12], %s2868_s28 }
 0x13d   : > { %s3661_s25 = sld [smem:[#allocation44_spill]]  ;;  %s536_s18 = scalar_lea.vmem [#allocation16], %s2871_s29 }
 0x13e   : > { %2099 = dma.hbm_to_vmem [thread:$0]  (!%p3659_p4), %s3234_s1, 16, %s506_s14, %s3660_s6  }
 0x13f   : > { %s543_s8 = sshll.u32 %s536_s18, 4  ;;  %s544_s8 = int_to_ptr.vmem [resolvable:$true] %s543_s8 }
 0x143   : > { %s3662_s9 = smov %s3661_s25  ;;  %s3260_s26 = scalar_lea.hbm %s3661_s25, %s2941_s0 }
 0x144   : > { %s2518_s16 = scalar_lea.hbm %s3260_s26, 16  ;;  %s2523_s1 = scalar_lea.hbm %s3662_s9, 32 }
 0x145   : > { %p2519_p13 = scmp.ne.s32.totalorder %s3260_s26, %s2518_s16  ;;  %p2524_p9 = scmp.lt.u32.totalorder %s3260_s26, %s3662_s9 }
 0x146   : > { %p2525_p2 = scmp.lt.u32.totalorder %s2523_s1, %s2518_s16  ;;  %p2527_p12 = scmp.lt.u32.totalorder %s2518_s16, %s3260_s26 }
 0x147   : > { %p2521_p11 = pnand %p2519_p13, %p2899_p6 }
 0x148   : > { %p2526_p7 = por %p2525_p2, %p2524_p9 }
 0x149   : > { %p2522_p0 = pneg %p2521_p11 }
 0x14a   : > { %p2528_p10 = por %p2527_p12, %p2526_p7 }
 0x14c   : > { %p2529_p5 = pnand %p2528_p10, %p2522_p0 }
 0x14e   : > { %2532 = shalt.err (!%p2529_p5)
}
 0x14f   : > { %s2533_s7 = scalar_lea.vmem %s544_s8, 16  ;;  %s2733_s3 = smov [#allocation16]  }
 0x150   : > { %p2534_p8 = scmp.ne.s32.totalorder %s544_s8, %s2533_s7  ;;  %s2538_s25 = sshll.u32 %s2733_s3, 4  ;;  %s2539_s25 = int_to_ptr.vmem [resolvable:$false] %s2538_s25 }
 0x151   : > { %s2540_s10 = scalar_lea.vmem %s2539_s25, 32  ;;  %p2541_p13 = scmp.lt.s32.totalorder %s544_s8, %s2539_s25 }
 0x152   : > { %p2536_p1 = pnand %p2534_p8, %p2899_p6  ;;  %p2542_p11 = scmp.lt.s32.totalorder %s2540_s10, %s2533_s7 }
 0x154   : > { %p2537_p3 = pneg %p2536_p1  ;;  %p2543_p4 = por %p2542_p11, %p2541_p13 }
 0x156   : > { %p2544_p2 = pnand %p2543_p4, %p2537_p3 }
 0x158   : > { %2547 = shalt.err (!%p2544_p2)
}
 0x159   : > { %p3663_p9 = scmp.ne.s32.totalorder %s3627_s24, 0  ;;  %s3664_s18 = scalar_lea.sflag [#allocation15], %s2868_s28 }
 0x15a   : > { %s3665_s1 = sld [smem:[#allocation46_spill]]  ;;  %s574_s6 = scalar_lea.vmem [#allocation19], %s2871_s29 }
 0x15b   : > { %2105 = dma.hbm_to_vmem [thread:$0]  (!%p3663_p9), %s3260_s26, 16, %s544_s8, %s3664_s18  }
 0x15c   : > { %s581_s7 = sshll.u32 %s574_s6, 4  ;;  %s582_s7 = int_to_ptr.vmem [resolvable:$true] %s581_s7 }
 0x160   : > { %s3286_s14 = scalar_lea.hbm %s3665_s1, %s2941_s0  ;;  %s2553_s26 = scalar_lea.hbm %s3665_s1, 32 }
 0x161   : > { %s2548_s3 = scalar_lea.hbm %s3286_s14, 16  ;;  %p2554_p12 = scmp.lt.u32.totalorder %s3286_s14, %s3665_s1 }
 0x162   : > { %p2549_p4 = scmp.ne.s32.totalorder %s3286_s14, %s2548_s3  ;;  %p2555_p10 = scmp.lt.u32.totalorder %s2553_s26, %s2548_s3 }
 0x163   : > { %p2557_p8 = scmp.lt.u32.totalorder %s2548_s3, %s3286_s14 }
 0x164   : > { %p2551_p0 = pnand %p2549_p4, %p2899_p6  ;;  %p2556_p5 = por %p2555_p10, %p2554_p12 }
 0x166   : > { %p2552_p7 = pneg %p2551_p0  ;;  %p2558_p1 = por %p2557_p8, %p2556_p5 }
 0x168   : > { %p2559_p3 = pnand %p2558_p1, %p2552_p7 }
 0x16a   : > { %2562 = shalt.err (!%p2559_p3)
}
 0x16b   : > { %s2563_s0 = scalar_lea.vmem %s582_s7, 16  ;;  %s2734_s29 = smov [#allocation19]  }
 0x16c   : > { %p2564_p13 = scmp.ne.s32.totalorder %s582_s7, %s2563_s0  ;;  %s2568_s16 = sshll.u32 %s2734_s29, 4  ;;  %s2569_s16 = int_to_ptr.vmem [resolvable:$false] %s2568_s16 }
 0x16d   : > { %s2570_s5 = scalar_lea.vmem %s2569_s16, 32  ;;  %p2571_p4 = scmp.lt.s32.totalorder %s582_s7, %s2569_s16 }
 0x16e   : > { %p2566_p11 = pnand %p2564_p13, %p2899_p6  ;;  %p2572_p0 = scmp.lt.s32.totalorder %s2570_s5, %s2563_s0 }
 0x170   : > { %p2567_p2 = pneg %p2566_p11  ;;  %p2573_p9 = por %p2572_p0, %p2571_p4 }
 0x172   : > { %p2574_p10 = pnand %p2573_p9, %p2567_p2 }
 0x174   : > { %2577 = shalt.err (!%p2574_p10)
}
 0x175   : > { %p3666_p12 = scmp.ne.s32.totalorder %s3627_s24, 0  ;;  %s3667_s6 = scalar_lea.sflag [#allocation18], %s2868_s28 }
 0x176   : > { %s3668_s3 = sld [smem:[#allocation33_spill]] }
 0x177   : > { %2111 = dma.hbm_to_vmem [thread:$0]  (!%p3666_p12), %s3286_s14, 16, %s582_s7, %s3667_s6  }
 0x17c   : > { %p3669_p7 = scmp.ne.s32.totalorder %s3668_s3, 0 }
 0x17d   : > { %s3311_s13 = sand.u32 (!%p3669_p7), 1, %s2696_s21   ;;  %p3670_p6 = scmp.ne.s32.totalorder (!%p3669_p7), %s3644_s12, 0 }
 0x17e   : > { %590 = sbr.rel (%p3669_p7) target bundleno = 3049 (0xbe9), region = 64  ;;  %s1897_s25 = sshll.u32 (!%p3669_p7), %s3311_s13, 3 }
 0x17f   : > { %s593_s10 = scalar_lea.sflag (!%p3669_p7), [#allocation3], %s3311_s13  ;;  %s3317_s26 = scalar_lea.vmem (!%p3669_p7), [#allocation2], %s1897_s25 }
 0x185   : > { %2651 = dma.done.wait (%p3670_p6), %s593_s10, 128  }
 0x186   : > { %2653 = vsyncadd (%p3670_p6), %s593_s10, 4294967168  ;;  %s3671_s24 = sld [smem:[#allocation28_spill]]  ;;  %s601_s28 = sand.u32 1, %s3072_s4  }
 0x187   : > { %s602_s8 = scalar_lea.sflag [#allocation6], %s601_s28  ;;  %p3672_p9 = scmp.ne.s32.totalorder %s3646_s23, 0 }
 0x18c   : > { %s3325_s14 = sand.u32 1, %s3671_s24  }
 0x18d   : > { %s3328_s7 = sshll.u32 %s3325_s14, 4 }
 0x18e   : > { %s605_s18 = scalar_lea.vmem [#allocation5], %s3328_s7 }
 0x18f   : > { %2655 = dma.done.wait (%p3672_p9), %s602_s8, 272  }
 0x190   : > { %2657 = vsyncadd (%p3672_p9), %s602_s8, 4294967024  ;;  %s613_s12 = scalar_lea.vmem [#allocation7], %s3325_s14  ;;  %s619_s0 = scalar_lea.sflag [#allocation9], %s601_s28 }
 0x191   : > { %s622_s29 = scalar_lea.vmem [#allocation8], %s3328_s7 }
 0x192   : > { %2659 = dma.done.wait (%p3672_p9), %s619_s0, 272  }
 0x193   : > { %2661 = vsyncadd (%p3672_p9), %s619_s0, 4294967024  ;;  %s630_s4 = scalar_lea.vmem [#allocation10], %s3325_s14  ;;  %s636_s16 = scalar_lea.sflag [#allocation12], %s601_s28 }
 0x194   : > { %2663 = dma.done.wait (%p3672_p9), %s636_s16, 32  }
 0x195   : > { %2665 = vsyncadd (%p3672_p9), %s636_s16, 4294967264  ;;  %s652_s3 = scalar_lea.sflag [#allocation15], %s601_s28  ;;  %s655_s10 = scalar_lea.vmem [#allocation14], %s3328_s7 }
 0x196   : > { %2667 = dma.done.wait (%p3672_p9), %s652_s3, 272  }
 0x197   : > { %2669 = vsyncadd (%p3672_p9), %s652_s3, 4294967024  ;;  %s1901_s24 = sshll.u32 %s3325_s14, 5  ;;  %s663_s8 = scalar_lea.vmem [#allocation16], %s3325_s14 }
 0x198   : > { %s669_s0 = scalar_lea.sflag [#allocation18], %s601_s28  ;;  %s3355_s5 = scalar_lea.vmem [#allocation17], %s1901_s24 }
 0x199   : > { %2671 = dma.done.wait (%p3672_p9), %s669_s0, 528  }
 0x19a   : > { %2673 = vsyncadd (%p3672_p9), %s669_s0, 4294966768  ;;  %s680_s16 = scalar_lea.vmem [#allocation19], %s3325_s14  ;;  %s3364_s6 = scalar_lea.vmem [#allocation20], %s1897_s25 }
 0x19b   : > { %s3673_s3 = sld [smem:[#allocation29_spill]] }
 0x1a1   : > { %p1903_p5 = scmp.ne.s32.totalorder %s3673_s3, 0 }
 0x1a2   : > { %v768_v0 = vld [vmem:[%s3317_s26] sm:$0xff] (!%p1903_p5)  ;;  %vm769_vm0 = vcmask (!%p1903_p5), 261120  }
 0x1a3   : > { %767 = sbr.rel (%p1903_p5) target bundleno = 426 (0x1aa), region = 112  ;;  %770 = vst.msk [vmem:[%s3364_s6] sm:$0xff] (!%p1903_p5), %vm769_vm0, %v768_v0 }
 0x1aa PF: > { %v2218_v1 = vld [vmem:[%s605_s18] sm:$0xff]   ;;  %v2735_v2 = vmov 0.0   ;;  %v2219_v3 = vld [vmem:[%s605_s18 + $0x8] sm:$0xff]   ;;  %vm2736_vm1 = vmmov 0   ;;  %vm798_vm2 = vcmask 261120   ;;  %s2737_s23 = smov 104  }
 0x1ab   : > { %1970 = vmatprep.subr.bf16.mxu0 %v2735_v2  ;;  %1978 = vmatprep.subr.bf16.mxu1 %v2735_v2  ;;  %v3378_v4 = vld [vmem:[%s3364_s6] sm:$0xff]  ;;  %s2738_s25 = smov 120   ;;  %s2739_s26 = smov 112   ;;  %vm859_vm3 = vcmask 64512   ;;  %vm1110_vm4 = vcmask 1043456   ;;  %vm1311_vm5 = vcmask 130048  }
 0x1ac   : > { %1971 = vmatpush3.bf16.msra.mxu0 %v2218_v1  ;;  %1974 = vmatprep.mubr.msk.bf16.mxu0 %vm2736_vm1, %v2735_v2  ;;  %v774_v5 = vpack.c.bf16 %v3378_v4, %v3378_v4  ;;  %v1904_v6 = vld [vmem:[%s613_s12] ss:$0 sm:$0xff]  ;;  %s2740_s28 = smov 96   ;;  %s2741_s18 = smov 64   ;;  %vm1313_vm6 = vcmask 195584   ;;  %vm1519_vm7 = vcmask 523264  }
 0x1ad   : > { %1972 = vmatprep.subr.bf16.mxu0 %v2735_v2  ;;  %1980 = vmatprep.mubr.msk.bf16.mxu1 %vm2736_vm1, %v2735_v2  ;;  %s2742_s12 = smov 8   ;;  %s2743_s24 = smov 16  }
 0x1ae   : > { %s2744_s0 = smov 24   ;;  %s3674_s7 = scalar_lea.vmem [#allocation11], %s3325_s14 }
 0x1af   : > { %p3678_p1 = scmp.ne.s32.totalorder %s3647_s15, 0 }
 0x1b0   : > { %1973 = vmatpush3.bf16.msra.mxu0 %v2219_v3 }
 0x1b1   : > { %1984 = vmatprep.subr.bf16.mxu0 %v2735_v2 }
 0x1b3   : > { %1975 = vmatmul.mubr.msk.bf16.vlgmr.msra.gmra.mrb[0].mxu0 %vm798_vm2, %v774_v5 }
 0x1b4   : > { %1986 = vmatprep.mubr.msk.bf16.mxu0 %vm2736_vm1, %v2735_v2 }
 0x286   : > { %v836_v7 = vpop.f32.mrb[0].mxu0 }
 0x287   : > { %v837_v8 = vadd.f32 %v1904_v6, %v836_v7  ;;  %v1976_v9 = vpop.f32.mrb[1].mxu0 }
 0x288   : > { %v839_v10 = vpop.f32.mrb[2].mxu0 }
 0x289   : > { %849 = vrot.lane.b32.xlu1 %v837_v8, %s2737_s23  ;;  %843 = vrot.lane.b32.xlu0 %v837_v8, %s2738_s25  ;;  %v1977_v11 = vpop.f32.mrb[3].mxu0  ;;  %v3391_v12 = vpack.c.bf16 %v837_v8, %v837_v8  ;;  %s1581_s23 = scalar_lea.sflag [#allocation4], %s3311_s13 }
 0x28d   : > { %846 = vrot.lane.b32.xlu0 %v837_v8, %s2739_s26  ;;  %857 = vrot.lane.b32.xlu1 %v3391_v12, %s2740_s28  ;;  %s2745_s26 = smov [#allocation20]  }
 0x2fb   : > { %v850_v13 = vpop.permute.xlu1 %849  ;;  %v844_v14 = vpop.permute.xlu0 %843 }
 0x2fc   : > { %v853_v15 = vpack.c.bf16 %v844_v14, %v844_v14  ;;  %v3394_v18 = vpack.c.bf16 %v850_v13, %v850_v13 }
 0x2fe   : > { %907 = vrot.lane.b32.xlu0 %v853_v15, %s2740_s28 }
 0x2ff   : > { %v847_v16 = vpop.permute.xlu0 %846  ;;  %v858_v17 = vpop.permute.xlu1 %857 }
 0x300   : > { %v3396_v19 = vpack.c.bf16 %v847_v16, %v847_v16  ;;  %v864_v20 = vsel %vm859_vm3, %v858_v17, 0 }
 0x301   : > { %1979 = vmatpush3.bf16.xpose.msra.mxu1 %v864_v20 }
 0x302   : > { %1005 = vrot.lane.b32.xlu0 %v3394_v18, %s2740_s28  ;;  %956 = vrot.lane.b32.xlu1 %v3396_v19, %s2740_s28  ;;  %s2582_s28 = sshll.u32 %s2745_s26, 4  ;;  %s2583_s28 = int_to_ptr.vmem [resolvable:$false] %s2582_s28 }
 0x303   : > { %1990 = vmatprep.subr.bf16.mxu1 %v2735_v2 }
 0x308   : > { %1981 = vmatmul.mubr.msk.bf16.vlgmr.msra.gmra.mrb[0].mxu1 %vm859_vm3, %v3391_v12 }
 0x309   : > { %1992 = vmatprep.mubr.msk.bf16.mxu1 %vm2736_vm1, %v2735_v2 }
 0x370   : > { %v908_v21 = vpop.permute.xlu0 %907 }
 0x371   : > { %v913_v22 = vsel %vm859_vm3, %v908_v21, 0 }
 0x372   : > { %1985 = vmatpush3.bf16.xpose.msra.mxu0 %v913_v22 }
 0x373   : > { %1996 = vmatprep.subr.bf16.mxu0 %v2735_v2 }
 0x374   : > { %v957_v23 = vpop.permute.xlu1 %956  ;;  %v1006_v25 = vpop.permute.xlu0 %1005 }
 0x375   : > { %v962_v24 = vsel %vm859_vm3, %v957_v23, 0  ;;  %v1011_v26 = vsel %vm859_vm3, %v1006_v25, 0 }
 0x376   : > { %1991 = vmatpush3.bf16.xpose.msra.mxu1 %v962_v24 }
 0x377   : > { %2002 = vmatprep.subr.bf16.mxu1 %v2735_v2 }
 0x379   : > { %1987 = vmatmul.mubr.msk.bf16.vlgmr.msra.gmra.mrb[4].mxu0 %vm859_vm3, %v853_v15 }
 0x37a   : > { %1997 = vmatpush3.bf16.xpose.msra.mxu0 %v1011_v26  ;;  %1998 = vmatprep.mubr.msk.bf16.mxu0 %vm2736_vm1, %v2735_v2 }
 0x37b   : > { %2008 = vmatprep.subr.bf16.mxu0 %v2735_v2 }
 0x37d   : > { %1993 = vmatmul.mubr.msk.bf16.vlgmr.msra.gmra.mrb[4].mxu1 %vm859_vm3, %v3396_v19 }
 0x37e   : > { %2004 = vmatprep.mubr.msk.bf16.mxu1 %vm2736_vm1, %v2735_v2 }
 0x381   : > { %1999 = vmatmul.mubr.msk.bf16.vlgmr.msra.gmra.mrb[8].mxu0 %vm859_vm3, %v3394_v18 }
 0x382   : > { %2010 = vmatprep.mubr.msk.bf16.mxu0 %vm2736_vm1, %v2735_v2 }
 0x3db   : > { %v900_v27 = vpop.f32.mrb[0].mxu1 }
 0x3dc   : > { %v1053_v28 = vmul.f32 0.35355338, %v900_v27  ;;  %v1982_v29 = vpop.f32.mrb[1].mxu1 }
 0x3dd   : > { %v903_v30 = vpop.f32.mrb[2].mxu1 }
 0x3de   : > { %v1983_v31 = vpop.f32.mrb[3].mxu1  ;;  %v1057_v32 = vsel %vm859_vm3, %v1053_v28, -inf }
 0x3df   : > { %1058 = vmax.xlane.f32.xlu1 %v1057_v32 }
 0x44c   : > { %v949_v33 = vpop.f32.mrb[4].mxu0 }
 0x44d   : > { %v1054_v34 = vmul.f32 0.35355338, %v949_v33  ;;  %v1988_v35 = vpop.f32.mrb[5].mxu0 }
 0x44e   : > { %v952_v36 = vpop.f32.mrb[6].mxu0 }
 0x44f   : > { %v1989_v37 = vpop.f32.mrb[7].mxu0  ;;  %v1060_v38 = vsel %vm859_vm3, %v1054_v34, -inf }
 0x450   : > { %v998_v39 = vpop.f32.mrb[4].mxu1  ;;  %1061 = vmax.xlane.f32.xlu0 %v1060_v38  ;;  %v2220_v37 = vld [vmem:[%s622_s29] sm:$0xff]   ;;  %v2221_v38 = vld [vmem:[%s622_s29 + $0x8] sm:$0xff]   ;;  %s3675_s29 = scalar_lea.vmem [#allocation13], %s3325_s14 }
 0x451   : > { %v1055_v40 = vmul.f32 0.35355338, %v998_v39  ;;  %v1994_v41 = vpop.f32.mrb[5].mxu1 }
 0x452   : > { %v1001_v42 = vpop.f32.mrb[6].mxu1 }
 0x453   : > { %v1995_v43 = vpop.f32.mrb[7].mxu1  ;;  %v1063_v44 = vsel %vm859_vm3, %v1055_v40, -inf }
 0x454   : > { %1064 = vmax.xlane.f32.xlu0 %v1063_v44  ;;  %v1047_v45 = vpop.f32.mrb[8].mxu0 }
 0x455   : > { %v1056_v46 = vmul.f32 0.35355338, %v1047_v45  ;;  %v2000_v47 = vpop.f32.mrb[9].mxu0 }
 0x456   : > { %v1050_v48 = vpop.f32.mrb[10].mxu0 }
 0x457   : > { %v2001_v49 = vpop.f32.mrb[11].mxu0  ;;  %v1066_v50 = vsel %vm859_vm3, %v1056_v46, -inf }
 0x458   : > { %1067 = vmax.xlane.f32.xlu1 %v1066_v50 }
 0x469   : > { %1154 = vrot.lane.b32.xlu1 %v853_v15, %s2741_s18 }
 0x46a   : > { %1105 = vrot.lane.b32.xlu0 %v3391_v12, %s2741_s18 }
 0x46c   : > { %v1059_v51 = vpop.xlane.xlu1 %1058 }
 0x46d   : > { %v1069_v52 = vsub.f32 %v1053_v28, %v1059_v51 }
 0x46f   : > { %v1073_v53 = vmul.f32 1.442695, %v1069_v52 }
 0x471   : > { %2228 = vpow2.f32 %v1073_v53 }
 0x47b   : > { %v2229_v54 = vpop.eup %2228 }
 0x47c   : > { %v1081_v55 = vsel %vm859_vm3, %v2229_v54, 0.0 }
 0x489   : > { %1082 = vadd.xlane.f32.xlu0 %v1081_v55 }
 0x4dd   : > { %v1062_v56 = vpop.xlane.xlu0 %1061 }
 0x4de   : > { %v1070_v57 = vsub.f32 %v1054_v34, %v1062_v56 }
 0x4e0   : > { %v1075_v58 = vmul.f32 1.442695, %v1070_v57 }
 0x4e1   : > { %v1065_v59 = vpop.xlane.xlu0 %1064 }
 0x4e2   : > { %2230 = vpow2.f32 %v1075_v58  ;;  %v1071_v60 = vsub.f32 %v1055_v40, %v1065_v59  ;;  %v1916_v58 = vld [vmem:[%s630_s4] ss:$0 sm:$0xff]  ;;  %s3676_s4 = sld [smem:[#allocation30_spill]] }
 0x4e4   : > { %v1077_v61 = vmul.f32 1.442695, %v1071_v60 }
 0x4e5   : > { %v1106_v62 = vpop.permute.xlu0 %1105  ;;  %v1068_v63 = vpop.xlane.xlu1 %1067 }
 0x4e6   : > { %2232 = vpow2.f32 %v1077_v61  ;;  %v1112_v0 = vsel %vm1110_vm4, %v1106_v62, 0  ;;  %v1072_v1 = vsub.f32 %v1056_v46, %v1068_v63 }
 0x4e7   : > { %2003 = vmatpush3.bf16.msra.mxu1 %v1112_v0 }
 0x4e8   : > { %v1079_v3 = vmul.f32 1.442695, %v1072_v1  ;;  %2014 = vmatprep.subr.bf16.mxu1 %v2735_v2  ;;  %s1933_s14 = sshll.u32 %s3676_s4, 7 }
 0x4e9   : > { %v1155_v5 = vpop.permute.xlu1 %1154 }
 0x4ea   : > { %2234 = vpow2.f32 %v1079_v3  ;;  %v1160_v6 = vsel %vm1110_vm4, %v1155_v5, 0 }
 0x4eb   : > { %2009 = vmatpush3.bf16.msra.mxu0 %v1160_v6 }
 0x4ec   : > { %v2231_v7 = vpop.eup %2230  ;;  %2020 = vmatprep.subr.bf16.mxu0 %v2735_v2 }
 0x4ed   : > { %v1084_v8 = vsel %vm859_vm3, %v2231_v7, 0.0 }
 0x4ee   : > { %1085 = vadd.xlane.f32.xlu1 %v1084_v8 }
 0x4f0   : > { %v2233_v9 = vpop.eup %2232 }
 0x4f1   : > { %v1087_v10 = vsel %vm859_vm3, %v2233_v9, 0.0 }
 0x4f2   : > { %1088 = vadd.xlane.f32.xlu0 %v1087_v10  ;;  %v2223_v10 = vld [vmem:[%s655_s10 + $0x8] sm:$0xff]  }
 0x4f4   : > { %v2235_v11 = vpop.eup %2234 }
 0x4f5   : > { %v1090_v12 = vsel %vm859_vm3, %v2235_v11, 0.0 }
 0x4f6   : > { %1091 = vadd.xlane.f32.xlu1 %v1090_v12 }
 0x507   : > { %1202 = vrot.lane.b32.xlu1 %v3396_v19, %s2741_s18 }
 0x508   : > { %1250 = vrot.lane.b32.xlu0 %v3394_v18, %s2741_s18  ;;  %s2584_s18 = scalar_lea.vmem %s2583_s28, 256 }
 0x516   : > { %v1083_v13 = vpop.xlane.xlu0 %1082 }
 0x517   : > { %2236 = vrcp.f32 %v1083_v13 }
 0x521   : > { %v2237_v14 = vpop.eup %2236 }
 0x522   : > { %v1097_v15 = vmul.f32 %v2237_v14, %v2229_v54 }
 0x524   : > { %v1101_v16 = vpack.c.bf16 %v1097_v15, %v1097_v15 }
 0x526   : > { %2005 = vmatmul.mubr.msk.bf16.vlgmr.msra.gmra.mrb[8].mxu1 %vm859_vm3, %v1101_v16  ;;  %v1920_v16 = vld [vmem:[%s3674_s7] ss:$0 sm:$0xff] }
 0x527   : > { %2016 = vmatprep.mubr.msk.bf16.mxu1 %vm2736_vm1, %v2735_v2 }
 0x57b   : > { %v1086_v17 = vpop.xlane.xlu1 %1085 }
 0x57c   : > { %2238 = vrcp.f32 %v1086_v17 }
 0x57f   : > { %v1089_v20 = vpop.xlane.xlu0 %1088 }
 0x580   : > { %2240 = vrcp.f32 %v1089_v20  ;;  %v1921_v20 = vld [vmem:[%s3675_s29] ss:$0 sm:$0xff] }
 0x583   : > { %v1092_v21 = vpop.xlane.xlu1 %1091  ;;  %v1251_v18 = vpop.permute.xlu0 %1250 }
 0x584   : > { %2242 = vrcp.f32 %v1092_v21  ;;  %v1256_v28 = vsel %vm1110_vm4, %v1251_v18, 0  ;;  %v2227_v18 = vld [vmem:[%s3355_s5 + $0x18] sm:$0xff]  }
 0x586   : > { %v2239_v19 = vpop.eup %2238 }
 0x587   : > { %v1098_v22 = vmul.f32 %v2239_v19, %v2231_v7  ;;  %v1203_v23 = vpop.permute.xlu1 %1202 }
 0x588   : > { %v1208_v24 = vsel %vm1110_vm4, %v1203_v23, 0  ;;  %v2226_v23 = vld [vmem:[%s3355_s5 + $0x10] sm:$0xff]  }
 0x589   : > { %2015 = vmatpush3.bf16.msra.mxu1 %v1208_v24  ;;  %v1102_v25 = vpack.c.bf16 %v1098_v22, %v1098_v22  ;;  %v1922_v24 = vld [vmem:[%s663_s8] ss:$0 sm:$0xff] }
 0x58a   : > { %v2241_v26 = vpop.eup %2240  ;;  %2026 = vmatprep.subr.bf16.mxu1 %v2735_v2 }
 0x58b   : > { %v1099_v27 = vmul.f32 %v2241_v26, %v2233_v9  ;;  %2011 = vmatmul.mubr.msk.bf16.vlgmr.msra.gmra.mrb[12].mxu0 %vm859_vm3, %v1102_v25  ;;  %v2222_v9 = vld [vmem:[%s655_s10] sm:$0xff]  }
 0x58c   : > { %2021 = vmatpush3.bf16.msra.mxu0 %v1256_v28  ;;  %2022 = vmatprep.mubr.msk.bf16.mxu0 %vm2736_vm1, %v2735_v2 }
 0x58d   : > { %v1103_v29 = vpack.c.bf16 %v1099_v27, %v1099_v27  ;;  %2034 = vmatprep.subr.bf16.mxu0 %v2735_v2 }
 0x58e   : > { %v2243_v30 = vpop.eup %2242 }
 0x58f   : > { %v1100_v31 = vmul.f32 %v2243_v30, %v2235_v11  ;;  %2017 = vmatmul.mubr.msk.bf16.vlgmr.msra.gmra.mrb[12].mxu1 %vm859_vm3, %v1103_v29  ;;  %v2225_v11 = vld [vmem:[%s3355_s5 + $0x8] sm:$0xff]  }
 0x590   : > { %2030 = vmatprep.mubr.msk.bf16.mxu1 %vm2736_vm1, %v2735_v2  ;;  %2027 = vmatpush3.bf16.msra.mxu1 %v2220_v37 }
 0x591   : > { %v1104_v32 = vpack.c.bf16 %v1100_v31, %v1100_v31  ;;  %2028 = vmatprep.subr.bf16.mxu1 %v2735_v2 }
 0x593   : > { %2023 = vmatmul.mubr.msk.bf16.vlgmr.msra.gmra.mrb[16].mxu0 %vm859_vm3, %v1104_v32  ;;  %v1926_v32 = vld [vmem:[%s680_s16] ss:$0 sm:$0xff]  ;;  %s3677_s16 = sld [smem:[#allocation47_spill]] }
 0x594   : > { %2038 = vmatprep.mubr.msk.bf16.mxu0 %vm2736_vm1, %v2735_v2  ;;  %2029 = vmatpush3.bf16.msra.mxu1 %v2221_v38 }
 0x595   : > { %2042 = vmatprep.subr.bf16.mxu1 %v2735_v2  ;;  %2035 = vmatpush3.bf16.msra.mxu0 %v2222_v9 }
 0x596   : > { %2036 = vmatprep.subr.bf16.mxu0 %v2735_v2 }
 0x599   : > { %2037 = vmatpush3.bf16.msra.mxu0 %v2223_v10  ;;  %s3501_s3 = scalar_lea.hbm %s3677_s16, %s1933_s14 }
 0x5f9   : > { %v1148_v33 = vpop.f32.mrb[8].mxu1 }
 0x5fa   : > { %v2006_v34 = vpop.f32.mrb[9].mxu1 }
 0x5fb   : > { %v1151_v35 = vpop.f32.mrb[10].mxu1 }
 0x5fc   : > { %v2007_v36 = vpop.f32.mrb[11].mxu1 }
 0x65e   : > { %v1196_v39 = vpop.f32.mrb[12].mxu0 }
 0x65f   : > { %1299 = vrot.lane.b32.xlu1 %v1196_v39, %s2742_s12  ;;  %v2012_v40 = vpop.f32.mrb[13].mxu0 }
 0x660   : > { %v1199_v41 = vpop.f32.mrb[14].mxu0 }
 0x661   : > { %v2013_v42 = vpop.f32.mrb[15].mxu0 }
 0x662   : > { %v1244_v43 = vpop.f32.mrb[12].mxu1 }
 0x663   : > { %1303 = vrot.lane.b32.xlu0 %v1244_v43, %s2743_s24  ;;  %v2018_v44 = vpop.f32.mrb[13].mxu1 }
 0x664   : > { %v1247_v45 = vpop.f32.mrb[14].mxu1 }
 0x665   : > { %v2019_v46 = vpop.f32.mrb[15].mxu1 }
 0x666   : > { %v1292_v47 = vpop.f32.mrb[16].mxu0 }
 0x667   : > { %1307 = vrot.lane.b32.xlu1 %v1292_v47, %s2744_s0  ;;  %v2024_v48 = vpop.f32.mrb[17].mxu0 }
 0x668   : > { %v1295_v49 = vpop.f32.mrb[18].mxu0 }
 0x669   : > { %v2025_v50 = vpop.f32.mrb[19].mxu0 }
 0x6d1   : > { %v1300_v51 = vpop.permute.xlu1 %1299 }
 0x6d2   : > { %v1310_v53 = vsel %vm859_vm3, %v1148_v33, %v1300_v51 }
 0x6d5   : > { %v1304_v52 = vpop.permute.xlu0 %1303 }
 0x6d6   : > { %v1312_v54 = vsel %vm1311_vm5, %v1310_v53, %v1304_v52 }
 0x6d9   : > { %v1308_v55 = vpop.permute.xlu1 %1307 }
 0x6da   : > { %v1314_v56 = vsel %vm1313_vm6, %v1312_v54, %v1308_v55 }
 0x6db   : > { %v1315_v57 = vpack.c.bf16 %v1314_v56, %v1314_v56 }
 0x6dd   : > { %2031 = vmatmul.mubr.msk.bf16.vlgmr.msra.gmra.mrb[16].mxu1 %vm798_vm2, %v1315_v57 }
 0x6de   : > { %2050 = vmatprep.mubr.msk.bf16.mxu1 %vm2736_vm1, %v2735_v2 }
 0x7b0   : > { %v1376_v59 = vpop.f32.mrb[16].mxu1 }
 0x7b1   : > { %v1377_v60 = vadd.f32 %v1916_v58, %v1376_v59  ;;  %v2032_v61 = vpop.f32.mrb[17].mxu1 }
 0x7b2   : > { %v1379_v62 = vpop.f32.mrb[18].mxu1 }
 0x7b3   : > { %v2033_v63 = vpop.f32.mrb[19].mxu1  ;;  %v1382_v0 = vadd.f32 %v1377_v60, %v3378_v4  ;;  %v2224_v4 = vld [vmem:[%s3355_s5] sm:$0xff]   ;;  %s1594_s5 = sshll.u32 %s3364_s6, 4  ;;  %s3503_s5 = int_to_ptr.vmem [resolvable:$true] %s1594_s5 }
 0x7b4   : > { %2043 = vmatpush3.bf16.msra.mxu1 %v2224_v4  ;;  %s2578_s25 = scalar_lea.vmem %s3503_s5, 128  ;;  %p2585_p11 = scmp.lt.s32.totalorder %s3503_s5, %s2583_s28 }
 0x7b5   : > { %v1383_v1 = vsel %vm798_vm2, %v1382_v0, 0.0  ;;  %2044 = vmatprep.subr.bf16.mxu1 %v2735_v2  ;;  %p2579_p8 = scmp.ne.s32.totalorder %s3503_s5, %s2578_s25  ;;  %p2586_p2 = scmp.lt.s32.totalorder %s2584_s18, %s2578_s25 }
 0x7b6   : > { %1384 = vadd.xlane.f32.xlu0 %v1383_v1 }
 0x7b7   : > { %p2580_p3 = pnand %p2579_p8, %p3678_p1  ;;  %p2587_p4 = por %p2586_p2, %p2585_p11 }
 0x7b8   : > { %2045 = vmatpush3.bf16.msra.mxu1 %v2225_v11 }
 0x7b9   : > { %2046 = vmatprep.subr.bf16.mxu1 %v2735_v2  ;;  %p2581_p13 = pneg %p2580_p3 }
 0x7bb   : > { %p2588_p0 = pnand %p2587_p4, %p2581_p13 }
 0x7bc   : > { %2047 = vmatpush3.bf16.msra.mxu1 %v2226_v23 }
 0x7bd   : > { %2048 = vmatprep.subr.bf16.mxu1 %v2735_v2 }
 0x7c0   : > { %2049 = vmatpush3.bf16.msra.mxu1 %v2227_v18 }
 0x843   : > { %v1385_v3 = vpop.xlane.xlu0 %1384 }
 0x844   : > { %v1387_v5 = vmul.f32 0.03125, %v1385_v3 }
 0x846   : > { %v1388_v6 = vsub.f32 %v1382_v0, %v1387_v5 }
 0x848   : > { %v1389_v7 = vmul.f32 %v1388_v6, %v1388_v6 }
 0x84a   : > { %v1390_v8 = vsel %vm798_vm2, %v1389_v7, 0.0 }
 0x84b   : > { %1391 = vadd.xlane.f32.xlu1 %v1390_v8 }
 0x8d8   : > { %v1392_v12 = vpop.xlane.xlu1 %1391 }
 0x8d9   : > { %v1393_v13 = vmul.f32 0.03125, %v1392_v12 }
 0x8db   : > { %v1394_v14 = vadd.f32 1e-05, %v1393_v13 }
 0x8dd   : > { %2244 = vrsqrt.f32 %v1394_v14 }
 0x8e7   : > { %v2245_v15 = vpop.eup %2244 }
 0x8e8   : > { %v1396_v17 = vmul.f32 %v2245_v15, %v1388_v6 }
 0x8ea   : > { %v1403_v21 = vmul.f32 %v1920_v16, %v1396_v17 }
 0x8ec   : > { %v1410_v19 = vadd.f32 %v1921_v20, %v1403_v21 }
 0x8ee   : > { %v1411_v22 = vpack.c.bf16 %v1410_v19, %v1410_v19 }
 0x8f0   : > { %2039 = vmatmul.mubr.msk.bf16.vlgmr.msra.gmra.mrb[20].mxu0 %vm798_vm2, %v1411_v22 }
 0x9c3   : > { %v1472_v25 = vpop.f32.mrb[20].mxu0 }
 0x9c4   : > { %v1473_v26 = vadd.f32 %v1922_v24, %v1472_v25  ;;  %v2040_v27 = vpop.f32.mrb[21].mxu0 }
 0x9c5   : > { %v1475_v28 = vpop.f32.mrb[22].mxu0 }
 0x9c6   : > { %v1478_v29 = vmax.f32 %v1473_v26, 0.0  ;;  %v2041_v30 = vpop.f32.mrb[23].mxu0 }
 0x9c8   : > { %v1479_v31 = vpack.c.bf16 %v1478_v29, %v1478_v29 }
 0x9ca   : > { %2051 = vmatmul.mubr.msk.bf16.vlgmr.msra.gmra.mrb[20].mxu1 %vm1519_vm7, %v1479_v31 }
 0xa9d   : > { %v1557_v33 = vpop.f32.mrb[20].mxu1 }
 0xa9e   : > { %v1558_v34 = vadd.f32 %v1926_v32, %v1557_v33  ;;  %v2052_v35 = vpop.f32.mrb[21].mxu1 }
 0xa9f   : > { %v1560_v36 = vpop.f32.mrb[22].mxu1 }
 0xaa0   : > { %v2053_v2 = vpop.f32.mrb[23].mxu1  ;;  %v1563_v37 = vadd.f32 %v1558_v34, %v1410_v19 }
 0xaa2   : > { %v1564_v38 = vsel %vm798_vm2, %v1563_v37, 0.0 }
 0xaa3   : > { %1565 = vadd.xlane.f32.xlu0 %v1564_v38 }
 0xb30   : > { %v1566_v39 = vpop.xlane.xlu0 %1565 }
 0xb31   : > { %v1567_v40 = vmul.f32 0.03125, %v1566_v39 }
 0xb33   : > { %v1568_v41 = vsub.f32 %v1563_v37, %v1567_v40 }
 0xb35   : > { %v1569_v42 = vmul.f32 %v1568_v41, %v1568_v41 }
 0xb37   : > { %v1570_v43 = vsel %vm798_vm2, %v1569_v42, 0.0 }
 0xb38   : > { %1571 = vadd.xlane.f32.xlu0 %v1570_v43 }
 0xbc5   : > { %v1572_v44 = vpop.xlane.xlu0 %1571 }
 0xbc6   : > { %v1573_v45 = vmul.f32 0.03125, %v1572_v44 }
 0xbc8   : > { %v1574_v46 = vadd.f32 1e-05, %v1573_v45 }
 0xbca   : > { %2246 = vrsqrt.f32 %v1574_v46 }
 0xbd4   : > { %v2247_v47 = vpop.eup %2246 }
 0xbd5   : > { %v1576_v48 = vmul.f32 %v2247_v47, %v1568_v41 }
 0xbd7   : > { %v1577_v49 = vmul.f32 %v1920_v16, %v1576_v48 }
 0xbd9   : > { %v1578_v50 = vadd.f32 %v1921_v20, %v1577_v49 }
 0xbdb   : > { %1579 = vst.msk [vmem:[%s3364_s6] sm:$0xff] %vm798_vm2, %v1578_v50 }
 0xbdc   : > { %2591 = shalt.err (!%p2588_p0)
}
 0xbdd   : > { %s2592_s13 = scalar_lea.hbm %s3501_s3, 128  ;;  %s2596_s24 = scalar_lea.hbm %s3677_s16, 256 }
 0xbde   : > { %p2593_p10 = scmp.ne.s32.totalorder %s3501_s3, %s2592_s13  ;;  %p2597_p6 = scmp.lt.u32.totalorder %s3501_s3, %s3677_s16 }
 0xbdf   : > { %p2598_p9 = scmp.lt.u32.totalorder %s2596_s24, %s2592_s13  ;;  %p2600_p8 = scmp.lt.u32.totalorder %s2592_s13, %s3501_s3 }
 0xbe0   : > { %p2594_p12 = pnand %p2593_p10, %p3678_p1 }
 0xbe1   : > { %p2599_p5 = por %p2598_p9, %p2597_p6 }
 0xbe2   : > { %p2595_p7 = pneg %p2594_p12 }
 0xbe3   : > { %p2601_p3 = por %p2600_p8, %p2599_p5 }
 0xbe5   : > { %p2602_p13 = pnand %p2601_p3, %p2595_p7 }
 0xbe7   : > { %2605 = shalt.err (!%p2602_p13)
}
 0xbe8   : > { %2076 = dma.vmem_to_hbm [thread:$0]  (%p3678_p1), %s3503_s5, 128, %s3501_s3, %s1581_s23  }
 0xbe9 PF: > { %p2117_p11 = scmp.ge.s32.totalorder %s2720_s27, 2  ;;  %s1606_s29 = sand.u32 1, %s2692_s20  }
 0xbea   : > { %p3679_p2 = scmp.ne.s32.totalorder %s3648_s17, 0  ;;  %s1607_s4 = scalar_lea.sflag [#allocation4], %s1606_s29 }
 0xbec   : > { %p2113_p4 = pnand %p2117_p11, %p3679_p2 }
 0xbee   : > { %2675 = dma.done.wait (!%p2113_p4), %s1607_s4, 128  }
 0xbef   : > { %2677 = vsyncadd (!%p2113_p4), %s1607_s4, 4294967168  ;;  %s42_s27 = sadd.s32 1, %s2720_s27   ;;  %s3680_s17 = sld [smem:[#allocation28_spill]] }
 0xbf0   : > { %p39_p0 = scmp.ge.s32.totalorder %s42_s27, 6   ;;  %s3681_s23 = sld [smem:[#allocation31_spill]] }
 0xbf1   : > { %s3682_s24 = sld [smem:[#allocation32_spill]]  ;;  %s3683_s25 = sld [smem:[#allocation34_spill]] }
 0xbf2   : > { %s3684_s26 = sld [smem:[#allocation35_spill]]  ;;  %s3685_s18 = smov %s2688_s19 }
 0xbf3   : > { %s3686_s19 = smov %s3117_s11  ;;  %s3687_s20 = smov %s2696_s21 }
 0xbf4   : > { %s3688_s21 = smov %s2700_s22  ;;  %s3689_s22 = smov %s3120_s2 }
 0xbf5   :  { %41 = sbr.rel (!%p39_p0) target bundleno = 32 (0x20), region = 233 }
 0xbfc   :  { %1612 = vsyncpa [#allocation3], 1 }
 0xbfd   :  { %1614 = vsyncpa [#allocation3 + $0x1], 1 }
 0xbfe   :  { %1615 = vsyncpa [#allocation6], 1 }
 0xbff   :  { %1617 = vsyncpa [#allocation6 + $0x1], 1 }
 0xc00   :  { %1618 = vsyncpa [#allocation9], 1 }
 0xc01   :  { %1620 = vsyncpa [#allocation9 + $0x1], 1 }
 0xc02   :  { %1621 = vsyncpa [#allocation12], 1 }
 0xc03   :  { %1623 = vsyncpa [#allocation12 + $0x1], 1 }
 0xc04   :  { %1624 = vsyncpa [#allocation15], 1 }
 0xc05   :  { %1626 = vsyncpa [#allocation15 + $0x1], 1 }
 0xc06   :  { %1627 = vsyncpa [#allocation18], 1 }
 0xc07   :  { %1629 = vsyncpa [#allocation18 + $0x1], 1 }
 0xc08   :  { %1630 = vsyncpa [#allocation4], 1 }
 0xc09   :  { %1632 = vsyncpa [#allocation4 + $0x1], 1 }

</bundles_post_ra>
